<compile_context>
chip_gen: v7x
topology: tpu7x:2x2x1
jax: 0.10.0
libtpu: 0.0.40
codegen_flags: <defaults>
</compile_context>

<pallas_src>
import functools
import math

import numpy as np
import jax
import jax.numpy as jnp
from jax import lax
from jax.experimental import pallas as pl
from jax.experimental.pallas import tpu as pltpu

EPS = 1e-5   # nn.BatchNorm1d default eps
K = 30       # ConvTranspose1d kernel_size


# --------------------------------- kernel ----------------------------------

def transconvnet_kernel(
    x_ref,                                  # (N, in_channels)            f32
    w1_ref, w2_ref, w3_ref,                 # backbone Linear weights     f32
    t1_ref, t2_ref, t3_ref,                 # padded Toeplitz conv mats   bf16
    p1_ref, p2_ref,                         # predictor block-diag mats   bf16
    p3_ref,                                 # final block-diag (padded)   f32
    vs_ref,                                 # (12, 128) packed small rows f32
    vw_ref,                                 # (3, Wwide) conv bias rows   f32
    bn2_ref,                                # (8,) BN(2) gamma/beta       f32 SMEM
    o_ref,                                  # (N, 128) padded output      f32
):
    f32, bf16 = jnp.float32, jnp.bfloat16
    dflt = lax.Precision.DEFAULT
    x = x_ref[...]
    m0 = w1_ref.shape[1]

    def bn_feat(h, g, be):
        # BatchNorm1d over (N, C): training-mode batch stats (biased var).
        mean = jnp.mean(h, axis=0, keepdims=True)
        var = jnp.mean((h - mean) ** 2, axis=0, keepdims=True)
        return (h - mean) * lax.rsqrt(var + EPS) * g + be

    def bn_half(zh, g, b):
        # One channel of BatchNorm1d(2): stats over all (N, feat) elements.
        m = jnp.mean(zh)
        v = jnp.mean((zh - m) ** 2)
        return (zh - m) * lax.rsqrt(v + EPS) * g + b

    # ---- backbone: Linear -> BN -> ReLU (x2), then Linear -> BN ----
    h = jnp.dot(x, w1_ref[...], preferred_element_type=f32) + vs_ref[0:1, :m0]
    h = jnp.maximum(bn_feat(h, vs_ref[1:2, :m0], vs_ref[2:3, :m0]), 0.0)
    h = jnp.dot(h, w2_ref[...], preferred_element_type=f32) + vs_ref[3:4, :m0]
    h = jnp.maximum(bn_feat(h, vs_ref[4:5, :m0], vs_ref[5:6, :m0]), 0.0)
    h = jnp.dot(h, w3_ref[...], preferred_element_type=f32) + vs_ref[6:7, :m0]
    h = bn_feat(h, vs_ref[7:8, :m0], vs_ref[8:9, :m0])   # no ReLU at backbone end

    # ---- transposed conv chain on flat (N, C*L) layout (bf16 MXU matmuls) ----
    c1 = t1_ref.shape[1]
    c2 = t2_ref.shape[1]
    c3 = t3_ref.shape[1]
    y = jnp.dot(h.astype(bf16), t1_ref[...],
                preferred_element_type=f32, precision=dflt) + vw_ref[0:1, :c1]
    y = jnp.maximum(y, 0.0)
    y = jnp.dot(y.astype(bf16), t2_ref[...],
                preferred_element_type=f32, precision=dflt) + vw_ref[1:2, :c2]
    y = jnp.maximum(y, 0.0)
    y = jnp.dot(y.astype(bf16), t3_ref[...],
                preferred_element_type=f32, precision=dflt) + vw_ref[2:3, :c3]
    # (N, c3) with the real 2*88 columns in front; padded columns are exact zeros.

    # ---- predictor: Linear -> BN(2) -> ReLU (x2), then Linear ----
    F2 = p1_ref.shape[1]          # 2 * mid_channels[4]
    feat = F2 // 2
    z = jnp.dot(y.astype(bf16), p1_ref[...],
                preferred_element_type=f32, precision=dflt) + vs_ref[9:10, :F2]
    z0 = bn_half(z[:, :feat], bn2_ref[0], bn2_ref[2])
    z1 = bn_half(z[:, feat:], bn2_ref[1], bn2_ref[3])
    z = jnp.maximum(jnp.concatenate([z0, z1], axis=1), 0.0)
    z = jnp.dot(z.astype(bf16), p2_ref[...],
                preferred_element_type=f32, precision=dflt) + vs_ref[10:11, :F2]
    z0 = bn_half(z[:, :feat], bn2_ref[4], bn2_ref[6])
    z1 = bn_half(z[:, feat:], bn2_ref[5], bn2_ref[7])
    z = jnp.maximum(jnp.concatenate([z0, z1], axis=1), 0.0)
    # final Linear in f32 (tiny), output lane-padded to 128 columns
    o_ref[...] = jnp.dot(z, p3_ref[...], preferred_element_type=f32) + vs_ref[11:12, :]


# --------------------------- parameter setup (once) -------------------------

def init_params(key, in_channels, mid, out_channels):
    m0, m1, m2, m3, m4 = mid
    assert m1 == m0, "reference module requires mid_channels[1]==mid_channels[0]"
    keys = iter(jax.random.split(key, 64))

    def lin(fan_in, fan_out):
        bound = 1.0 / math.sqrt(fan_in)
        W = jax.random.uniform(next(keys), (fan_in, fan_out), jnp.float32, -bound, bound)
        b = jax.random.uniform(next(keys), (fan_out,), jnp.float32, -bound, bound)
        return W, b

    def bn(c):
        g = jax.random.uniform(next(keys), (c,), jnp.float32, 0.5, 1.5)
        b = jax.random.uniform(next(keys), (c,), jnp.float32, -0.1, 0.1)
        return g, b

    def convt(cin, cout):
        bound = 1.0 / math.sqrt(cin * K)
        W = jax.random.uniform(next(keys), (cin, cout, K), jnp.float32, -bound, bound)
        b = jax.random.uniform(next(keys), (cout,), jnp.float32, -bound, bound)
        return W, b

    L = 1
    for _ in range(3):
        L = L + K - 1   # ConvTranspose1d: Lout = Lin + K - 1 -> 88

    return dict(
        bb=[(*lin(in_channels, m0), *bn(m0)),
            (*lin(m0, m0), *bn(m0)),
            (*lin(m0, m0), *bn(m1))],
        conv=[convt(m1, m2), convt(m2, m3), convt(m3, 2)],
        pred_lin=[lin(L, m4), lin(m4, m4), lin(m4, out_channels)],
        pred_bn=[bn(2), bn(2)],
    )


def _round_up(v, m):
    return (v + m - 1) // m * m


def _conv_transpose_toeplitz_np(W, Lin):
    """ConvTranspose1d weight (Cin, Cout, K) -> dense (Cin*Lin, Cout*Lout)."""
    W = np.asarray(W, np.float32)
    Cin, Cout, Kk = W.shape
    Lout = Lin + Kk - 1
    T = np.zeros((Cin, Lin, Cout, Lout), np.float32)
    for i in range(Lin):
        T[:, i, :, i:i + Kk] = W
    return T.reshape(Cin * Lin, Cout * Lout)


def _block_diag2_np(A):
    A = np.asarray(A, np.float32)
    r, c = A.shape
    out = np.zeros((2 * r, 2 * c), np.float32)
    out[:r, :c] = A
    out[r:, c:] = A
    return out


def _pad2_np(a, rows, cols):
    out = np.zeros((rows, cols), np.float32)
    out[:a.shape[0], :a.shape[1]] = a
    return out


def pack_params(params, out_channels):
    """Host-side, one-time weight glue: Toeplitz / block-diag / pad / pack."""
    (w1, b1, g1, be1), (w2, b2, g2, be2), (w3, b3, g3, be3) = params["bb"]
    (cw1, cb1), (cw2, cb2), (cw3, cb3) = params["conv"]
    (A1, pb1), (A2, pb2), (A3, pb3) = params["pred_lin"]
    (pg1, pbe1), (pg2, pbe2) = params["pred_bn"]

    npf = lambda a: np.asarray(a, np.float32)
    m0 = w1.shape[1]
    m4 = A1.shape[1]
    L1, L2, L3 = K, 2 * K - 1, 3 * K - 2          # 30, 59, 88

    # Transposed convs as block-Toeplitz matmuls, zero-padded to 128-mult lanes.
    T1 = _conv_transpose_toeplitz_np(cw1, 1)      # (m1,      m2*L1)
    T2 = _conv_transpose_toeplitz_np(cw2, L1)     # (m2*L1,   m3*L2)
    T3 = _conv_transpose_toeplitz_np(cw3, L2)     # (m3*L2,   2*L3)
    C1 = _round_up(T1.shape[1], 128)              # 512
    C2 = _round_up(T2.shape[1], 128)              # 512
    C3 = _round_up(T3.shape[1], 128)              # 256
    WW = max(C1, C2, C3)
    t1 = _pad2_np(T1, T1.shape[0], C1)
    t2 = _pad2_np(T2, C1, C2)
    t3 = _pad2_np(T3, C2, C3)

    # Predictor per-position Linears as block-diagonal matmuls.
    P1 = _block_diag2_np(A1)                      # (2*L3, 2*m4)
    P2 = _block_diag2_np(A2)                      # (2*m4, 2*m4)
    P3 = _block_diag2_np(A3)                      # (2*m4, 2*oc)
    OW = _round_up(P3.shape[1], 128)              # 128 (lane-dense output)
    p1 = _pad2_np(P1, C3, 2 * m4)
    p2 = np.asarray(P2, np.float32)
    p3 = _pad2_np(P3, 2 * m4, OW)

    # Packed small bias/affine rows, width 128.
    SW = 128
    assert m0 <= SW and 2 * m4 <= SW and 2 * out_channels <= SW and OW == SW
    rows = [b1, g1, be1, b2, g2, be2, b3, g3, be3,
            np.tile(npf(pb1), 2), np.tile(npf(pb2), 2), np.tile(npf(pb3), 2)]
    vsmall = np.zeros((len(rows), SW), np.float32)
    for i, r in enumerate(rows):
        r = npf(r)
        vsmall[i, :r.shape[0]] = r

    # Packed wide conv-bias rows (per-channel bias repeated over positions).
    vwide = np.zeros((3, WW), np.float32)
    vwide[0, :T1.shape[1]] = np.repeat(npf(cb1), L1)
    vwide[1, :T2.shape[1]] = np.repeat(npf(cb2), L2)
    vwide[2, :T3.shape[1]] = np.repeat(npf(cb3), L3)

    # BatchNorm1d(2) scalars -> SMEM: [g1c0,g1c1,be1c0,be1c1,g2c0,g2c1,be2c0,be2c1]
    bn2 = np.concatenate([npf(pg1), npf(pbe1), npf(pg2), npf(pbe2)])

    return dict(
        w1=jnp.asarray(npf(w1)), w2=jnp.asarray(npf(w2)), w3=jnp.asarray(npf(w3)),
        t1=jnp.asarray(t1, jnp.bfloat16), t2=jnp.asarray(t2, jnp.bfloat16),
        t3=jnp.asarray(t3, jnp.bfloat16),
        p1=jnp.asarray(p1, jnp.bfloat16), p2=jnp.asarray(p2, jnp.bfloat16),
        p3=jnp.asarray(p3, jnp.float32),
        vsmall=jnp.asarray(vsmall), vwide=jnp.asarray(vwide),
        bn2=jnp.asarray(bn2),
    )


# --------------------------------- forward ----------------------------------

@functools.partial(jax.jit, static_argnames=("out_channels",))
def transconvnet_forward(x, packed, out_channels):
    N = x.shape[0]
    out_w = packed["p3"].shape[1]
    vmem = pl.BlockSpec(memory_space=pltpu.MemorySpace.VMEM)
    smem = pl.BlockSpec(memory_space=pltpu.MemorySpace.SMEM)
    out_flat = pl.pallas_call(
        transconvnet_kernel,
        out_shape=jax.ShapeDtypeStruct((N, out_w), jnp.float32),
        in_specs=[vmem] * 12 + [smem],
        out_specs=vmem,
    )(x,
      packed["w1"], packed["w2"], packed["w3"],
      packed["t1"], packed["t2"], packed["t3"],
      packed["p1"], packed["p2"], packed["p3"],
      packed["vsmall"], packed["vwide"], packed["bn2"])
    return out_flat[:, :2 * out_channels].reshape(N, 2, out_channels)


# ----------------------------- pure-JAX reference ---------------------------

def transconvnet_reference(x, params):
    def bn(t, g, b, axes, pshape):
        mean = jnp.mean(t, axis=axes, keepdims=True)
        var = jnp.mean((t - mean) ** 2, axis=axes, keepdims=True)
        return (t - mean) / jnp.sqrt(var + EPS) * g.reshape(pshape) + b.reshape(pshape)

    h = x
    for i, (W, b, g, be) in enumerate(params["bb"]):
        h = h @ W + b
        h = bn(h, g, be, (0,), (1, -1))
        if i < 2:
            h = jnp.maximum(h, 0.0)

    y = h[:, :, None]                      # nn.Unflatten(-1, (-1, 1)) -> (N, C, 1)
    for i, (W, b) in enumerate(params["conv"]):
        N, _, Lin = y.shape
        Cout = W.shape[1]
        out = jnp.zeros((N, Cout, Lin + K - 1), jnp.float32)
        for j in range(Lin):
            out = out.at[:, :, j:j + K].add(jnp.einsum("nc,cok->nok", y[:, :, j], W))
        y = out + b[None, :, None]
        if i < 2:
            y = jnp.maximum(y, 0.0)

    (g1, be1), (g2, be2) = params["pred_bn"]
    (A1, b1), (A2, b2), (A3, b3) = params["pred_lin"]
    z = jnp.einsum("ncl,lf->ncf", y, A1) + b1
    z = jnp.maximum(bn(z, g1, be1, (0, 2), (1, 2, 1)), 0.0)
    z = jnp.einsum("ncf,fg->ncg", z, A2) + b2
    z = jnp.maximum(bn(z, g2, be2, (0, 2), (1, 2, 1)), 0.0)
    return jnp.einsum("ncf,fo->nco", z, A3) + b3


# ----------------------------------- main -----------------------------------

if __name__ == "__main__":
    jax.config.update("jax_default_matmul_precision", "highest")

    in_channels, out_channels = 16, 3
    mid_channels = [32, 32, 16, 8, 32]

    key = jax.random.PRNGKey(0)
    kx, kp = jax.random.split(key)
    N = 8
    x = jax.random.normal(kx, (N, in_channels), jnp.float32)
    params = init_params(kp, in_channels, mid_channels, out_channels)

    # One-time weight glue (hoisted out of the per-call jitted hot path).
    packed = pack_params(params, out_channels)

    out = transconvnet_forward(x, packed, out_channels)
    out = jax.block_until_ready(out)
    assert out.shape == (N, 2, out_channels)

    ref = transconvnet_reference(x, params)
    max_err = float(jnp.max(jnp.abs(out - ref)))
    # Tolerance slightly loosened vs. the f32 reference to cover the bf16 MXU path.
    assert jnp.allclose(out, ref, atol=2e-2, rtol=2e-2), f"max abs err {max_err}"

    print("KERNEL_OK")
</pallas_src>

<mosaic_0001>
module attributes {stable_mosaic.version = 11 : i64} {
  func.func @transconvnet_kernel(%arg0: memref<8x16xf32, #tpu.memory_space<vmem>>, %arg1: memref<16x32xf32, #tpu.memory_space<vmem>>, %arg2: memref<32x32xf32, #tpu.memory_space<vmem>>, %arg3: memref<32x32xf32, #tpu.memory_space<vmem>>, %arg4: memref<32x512xbf16, #tpu.memory_space<vmem>>, %arg5: memref<512x512xbf16, #tpu.memory_space<vmem>>, %arg6: memref<512x256xbf16, #tpu.memory_space<vmem>>, %arg7: memref<256x64xbf16, #tpu.memory_space<vmem>>, %arg8: memref<64x64xbf16, #tpu.memory_space<vmem>>, %arg9: memref<64x128xf32, #tpu.memory_space<vmem>>, %arg10: memref<12x128xf32, #tpu.memory_space<vmem>>, %arg11: memref<3x512xf32, #tpu.memory_space<vmem>>, %arg12: memref<8xf32, #tpu.memory_space<smem>>, %arg13: memref<8x128xf32, #tpu.memory_space<vmem>>) attributes {dimension_semantics = [], scalar_prefetch = 0 : i64, scratch_operands = 0 : i64, tpu.core_type = #tpu.core_type<tc>} {
    %c0 = arith.constant 0 : index
    %c0_0 = arith.constant 0 : index
    %0 = vector.load %arg0[%c0, %c0_0] : memref<8x16xf32, #tpu.memory_space<vmem>>, vector<8x16xf32>
    %c0_1 = arith.constant 0 : index
    %c0_2 = arith.constant 0 : index
    %1 = vector.load %arg1[%c0_1, %c0_2] : memref<16x32xf32, #tpu.memory_space<vmem>>, vector<16x32xf32>
    %cst = arith.constant dense<0.000000e+00> : vector<8x32xf32>
    %2 = tpu.matmul %0, %1, %cst {dimension_numbers = #tpu.dot_dimension_numbers<[1], [0], [0], [1], [0, 0, 1, 1], [], []>, precision = #tpu.contract_precision<fp32>} : vector<8x16xf32>, vector<16x32xf32>, vector<8x32xf32> -> vector<8x32xf32>
    %c0_3 = arith.constant 0 : index
    %c0_4 = arith.constant 0 : index
    %3 = vector.load %arg10[%c0_3, %c0_4] : memref<12x128xf32, #tpu.memory_space<vmem>>, vector<1x32xf32>
    %4 = vector.broadcast %3 : vector<1x32xf32> to vector<8x32xf32>
    %5 = arith.addf %2, %4 : vector<8x32xf32>
    %c1 = arith.constant 1 : index
    %c0_5 = arith.constant 0 : index
    %6 = vector.load %arg10[%c1, %c0_5] : memref<12x128xf32, #tpu.memory_space<vmem>>, vector<1x32xf32>
    %c2 = arith.constant 2 : index
    %c0_6 = arith.constant 0 : index
    %7 = vector.load %arg10[%c2, %c0_6] : memref<12x128xf32, #tpu.memory_space<vmem>>, vector<1x32xf32>
    %cst_7 = arith.constant dense<0.000000e+00> : vector<32xf32>
    %8 = vector.multi_reduction <add>, %5, %cst_7 [0] : vector<8x32xf32> to vector<32xf32>
    %9 = vector.shape_cast %8 : vector<32xf32> to vector<1x32xf32>
    %cst_8 = arith.constant 8.000000e+00 : f32
    %10 = vector.broadcast %cst_8 : f32 to vector<1x32xf32>
    %11 = arith.divf %9, %10 : vector<1x32xf32>
    %12 = vector.broadcast %11 : vector<1x32xf32> to vector<8x32xf32>
    %13 = arith.subf %5, %12 : vector<8x32xf32>
    %14 = arith.mulf %13, %13 : vector<8x32xf32>
    %cst_9 = arith.constant dense<0.000000e+00> : vector<32xf32>
    %15 = vector.multi_reduction <add>, %14, %cst_9 [0] : vector<8x32xf32> to vector<32xf32>
    %16 = vector.shape_cast %15 : vector<32xf32> to vector<1x32xf32>
    %cst_10 = arith.constant 8.000000e+00 : f32
    %17 = vector.broadcast %cst_10 : f32 to vector<1x32xf32>
    %18 = arith.divf %16, %17 : vector<1x32xf32>
    %19 = vector.broadcast %11 : vector<1x32xf32> to vector<8x32xf32>
    %20 = arith.subf %5, %19 : vector<8x32xf32>
    %cst_11 = arith.constant 9.99999974E-6 : f32
    %21 = vector.broadcast %cst_11 : f32 to vector<1x32xf32>
    %22 = arith.addf %18, %21 : vector<1x32xf32>
    %23 = math.rsqrt %22 : vector<1x32xf32>
    %24 = vector.broadcast %23 : vector<1x32xf32> to vector<8x32xf32>
    %25 = arith.mulf %20, %24 : vector<8x32xf32>
    %26 = vector.broadcast %6 : vector<1x32xf32> to vector<8x32xf32>
    %27 = arith.mulf %25, %26 : vector<8x32xf32>
    %28 = vector.broadcast %7 : vector<1x32xf32> to vector<8x32xf32>
    %29 = arith.addf %27, %28 : vector<8x32xf32>
    %cst_12 = arith.constant 0.000000e+00 : f32
    %30 = vector.broadcast %cst_12 : f32 to vector<8x32xf32>
    %31 = arith.maximumf %29, %30 : vector<8x32xf32>
    %c0_13 = arith.constant 0 : index
    %c0_14 = arith.constant 0 : index
    %32 = vector.load %arg2[%c0_13, %c0_14] : memref<32x32xf32, #tpu.memory_space<vmem>>, vector<32x32xf32>
    %cst_15 = arith.constant dense<0.000000e+00> : vector<8x32xf32>
    %33 = tpu.matmul %31, %32, %cst_15 {dimension_numbers = #tpu.dot_dimension_numbers<[1], [0], [0], [1], [0, 0, 1, 1], [], []>, precision = #tpu.contract_precision<fp32>} : vector<8x32xf32>, vector<32x32xf32>, vector<8x32xf32> -> vector<8x32xf32>
    %c3 = arith.constant 3 : index
    %c0_16 = arith.constant 0 : index
    %34 = vector.load %arg10[%c3, %c0_16] : memref<12x128xf32, #tpu.memory_space<vmem>>, vector<1x32xf32>
    %35 = vector.broadcast %34 : vector<1x32xf32> to vector<8x32xf32>
    %36 = arith.addf %33, %35 : vector<8x32xf32>
    %c4 = arith.constant 4 : index
    %c0_17 = arith.constant 0 : index
    %37 = vector.load %arg10[%c4, %c0_17] : memref<12x128xf32, #tpu.memory_space<vmem>>, vector<1x32xf32>
    %c5 = arith.constant 5 : index
    %c0_18 = arith.constant 0 : index
    %38 = vector.load %arg10[%c5, %c0_18] : memref<12x128xf32, #tpu.memory_space<vmem>>, vector<1x32xf32>
    %cst_19 = arith.constant dense<0.000000e+00> : vector<32xf32>
    %39 = vector.multi_reduction <add>, %36, %cst_19 [0] : vector<8x32xf32> to vector<32xf32>
    %40 = vector.shape_cast %39 : vector<32xf32> to vector<1x32xf32>
    %cst_20 = arith.constant 8.000000e+00 : f32
    %41 = vector.broadcast %cst_20 : f32 to vector<1x32xf32>
    %42 = arith.divf %40, %41 : vector<1x32xf32>
    %43 = vector.broadcast %42 : vector<1x32xf32> to vector<8x32xf32>
    %44 = arith.subf %36, %43 : vector<8x32xf32>
    %45 = arith.mulf %44, %44 : vector<8x32xf32>
    %cst_21 = arith.constant dense<0.000000e+00> : vector<32xf32>
    %46 = vector.multi_reduction <add>, %45, %cst_21 [0] : vector<8x32xf32> to vector<32xf32>
    %47 = vector.shape_cast %46 : vector<32xf32> to vector<1x32xf32>
    %cst_22 = arith.constant 8.000000e+00 : f32
    %48 = vector.broadcast %cst_22 : f32 to vector<1x32xf32>
    %49 = arith.divf %47, %48 : vector<1x32xf32>
    %50 = vector.broadcast %42 : vector<1x32xf32> to vector<8x32xf32>
    %51 = arith.subf %36, %50 : vector<8x32xf32>
    %cst_23 = arith.constant 9.99999974E-6 : f32
    %52 = vector.broadcast %cst_23 : f32 to vector<1x32xf32>
    %53 = arith.addf %49, %52 : vector<1x32xf32>
    %54 = math.rsqrt %53 : vector<1x32xf32>
    %55 = vector.broadcast %54 : vector<1x32xf32> to vector<8x32xf32>
    %56 = arith.mulf %51, %55 : vector<8x32xf32>
    %57 = vector.broadcast %37 : vector<1x32xf32> to vector<8x32xf32>
    %58 = arith.mulf %56, %57 : vector<8x32xf32>
    %59 = vector.broadcast %38 : vector<1x32xf32> to vector<8x32xf32>
    %60 = arith.addf %58, %59 : vector<8x32xf32>
    %cst_24 = arith.constant 0.000000e+00 : f32
    %61 = vector.broadcast %cst_24 : f32 to vector<8x32xf32>
    %62 = arith.maximumf %60, %61 : vector<8x32xf32>
    %c0_25 = arith.constant 0 : index
    %c0_26 = arith.constant 0 : index
    %63 = vector.load %arg3[%c0_25, %c0_26] : memref<32x32xf32, #tpu.memory_space<vmem>>, vector<32x32xf32>
    %cst_27 = arith.constant dense<0.000000e+00> : vector<8x32xf32>
    %64 = tpu.matmul %62, %63, %cst_27 {dimension_numbers = #tpu.dot_dimension_numbers<[1], [0], [0], [1], [0, 0, 1, 1], [], []>, precision = #tpu.contract_precision<fp32>} : vector<8x32xf32>, vector<32x32xf32>, vector<8x32xf32> -> vector<8x32xf32>
    %c6 = arith.constant 6 : index
    %c0_28 = arith.constant 0 : index
    %65 = vector.load %arg10[%c6, %c0_28] : memref<12x128xf32, #tpu.memory_space<vmem>>, vector<1x32xf32>
    %66 = vector.broadcast %65 : vector<1x32xf32> to vector<8x32xf32>
    %67 = arith.addf %64, %66 : vector<8x32xf32>
    %c7 = arith.constant 7 : index
    %c0_29 = arith.constant 0 : index
    %68 = vector.load %arg10[%c7, %c0_29] : memref<12x128xf32, #tpu.memory_space<vmem>>, vector<1x32xf32>
    %c8 = arith.constant 8 : index
    %c0_30 = arith.constant 0 : index
    %69 = vector.load %arg10[%c8, %c0_30] : memref<12x128xf32, #tpu.memory_space<vmem>>, vector<1x32xf32>
    %cst_31 = arith.constant dense<0.000000e+00> : vector<32xf32>
    %70 = vector.multi_reduction <add>, %67, %cst_31 [0] : vector<8x32xf32> to vector<32xf32>
    %71 = vector.shape_cast %70 : vector<32xf32> to vector<1x32xf32>
    %cst_32 = arith.constant 8.000000e+00 : f32
    %72 = vector.broadcast %cst_32 : f32 to vector<1x32xf32>
    %73 = arith.divf %71, %72 : vector<1x32xf32>
    %74 = vector.broadcast %73 : vector<1x32xf32> to vector<8x32xf32>
    %75 = arith.subf %67, %74 : vector<8x32xf32>
    %76 = arith.mulf %75, %75 : vector<8x32xf32>
    %cst_33 = arith.constant dense<0.000000e+00> : vector<32xf32>
    %77 = vector.multi_reduction <add>, %76, %cst_33 [0] : vector<8x32xf32> to vector<32xf32>
    %78 = vector.shape_cast %77 : vector<32xf32> to vector<1x32xf32>
    %cst_34 = arith.constant 8.000000e+00 : f32
    %79 = vector.broadcast %cst_34 : f32 to vector<1x32xf32>
    %80 = arith.divf %78, %79 : vector<1x32xf32>
    %81 = vector.broadcast %73 : vector<1x32xf32> to vector<8x32xf32>
    %82 = arith.subf %67, %81 : vector<8x32xf32>
    %cst_35 = arith.constant 9.99999974E-6 : f32
    %83 = vector.broadcast %cst_35 : f32 to vector<1x32xf32>
    %84 = arith.addf %80, %83 : vector<1x32xf32>
    %85 = math.rsqrt %84 : vector<1x32xf32>
    %86 = vector.broadcast %85 : vector<1x32xf32> to vector<8x32xf32>
    %87 = arith.mulf %82, %86 : vector<8x32xf32>
    %88 = vector.broadcast %68 : vector<1x32xf32> to vector<8x32xf32>
    %89 = arith.mulf %87, %88 : vector<8x32xf32>
    %90 = vector.broadcast %69 : vector<1x32xf32> to vector<8x32xf32>
    %91 = arith.addf %89, %90 : vector<8x32xf32>
    %92 = arith.truncf %91 : vector<8x32xf32> to vector<8x32xbf16>
    %c0_36 = arith.constant 0 : index
    %c0_37 = arith.constant 0 : index
    %93 = vector.load %arg4[%c0_36, %c0_37] : memref<32x512xbf16, #tpu.memory_space<vmem>>, vector<32x512xbf16>
    %cst_38 = arith.constant dense<0.000000e+00> : vector<8x512xf32>
    %94 = tpu.matmul %92, %93, %cst_38 {dimension_numbers = #tpu.dot_dimension_numbers<[1], [0], [0], [1], [0, 0, 1, 1], [], []>} : vector<8x32xbf16>, vector<32x512xbf16>, vector<8x512xf32> -> vector<8x512xf32>
    %c0_39 = arith.constant 0 : index
    %c0_40 = arith.constant 0 : index
    %95 = vector.load %arg11[%c0_39, %c0_40] : memref<3x512xf32, #tpu.memory_space<vmem>>, vector<1x512xf32>
    %96 = vector.broadcast %95 : vector<1x512xf32> to vector<8x512xf32>
    %97 = arith.addf %94, %96 : vector<8x512xf32>
    %cst_41 = arith.constant 0.000000e+00 : f32
    %98 = vector.broadcast %cst_41 : f32 to vector<8x512xf32>
    %99 = arith.maximumf %97, %98 : vector<8x512xf32>
    %100 = arith.truncf %99 : vector<8x512xf32> to vector<8x512xbf16>
    %c0_42 = arith.constant 0 : index
    %c0_43 = arith.constant 0 : index
    %101 = vector.load %arg5[%c0_42, %c0_43] : memref<512x512xbf16, #tpu.memory_space<vmem>>, vector<512x512xbf16>
    %cst_44 = arith.constant dense<0.000000e+00> : vector<8x512xf32>
    %102 = tpu.matmul %100, %101, %cst_44 {dimension_numbers = #tpu.dot_dimension_numbers<[1], [0], [0], [1], [0, 0, 1, 1], [], []>} : vector<8x512xbf16>, vector<512x512xbf16>, vector<8x512xf32> -> vector<8x512xf32>
    %c1_45 = arith.constant 1 : index
    %c0_46 = arith.constant 0 : index
    %103 = vector.load %arg11[%c1_45, %c0_46] : memref<3x512xf32, #tpu.memory_space<vmem>>, vector<1x512xf32>
    %104 = vector.broadcast %103 : vector<1x512xf32> to vector<8x512xf32>
    %105 = arith.addf %102, %104 : vector<8x512xf32>
    %cst_47 = arith.constant 0.000000e+00 : f32
    %106 = vector.broadcast %cst_47 : f32 to vector<8x512xf32>
    %107 = arith.maximumf %105, %106 : vector<8x512xf32>
    %108 = arith.truncf %107 : vector<8x512xf32> to vector<8x512xbf16>
    %c0_48 = arith.constant 0 : index
    %c0_49 = arith.constant 0 : index
    %109 = vector.load %arg6[%c0_48, %c0_49] : memref<512x256xbf16, #tpu.memory_space<vmem>>, vector<512x256xbf16>
    %cst_50 = arith.constant dense<0.000000e+00> : vector<8x256xf32>
    %110 = tpu.matmul %108, %109, %cst_50 {dimension_numbers = #tpu.dot_dimension_numbers<[1], [0], [0], [1], [0, 0, 1, 1], [], []>} : vector<8x512xbf16>, vector<512x256xbf16>, vector<8x256xf32> -> vector<8x256xf32>
    %c2_51 = arith.constant 2 : index
    %c0_52 = arith.constant 0 : index
    %111 = vector.load %arg11[%c2_51, %c0_52] : memref<3x512xf32, #tpu.memory_space<vmem>>, vector<1x256xf32>
    %112 = vector.broadcast %111 : vector<1x256xf32> to vector<8x256xf32>
    %113 = arith.addf %110, %112 : vector<8x256xf32>
    %114 = arith.truncf %113 : vector<8x256xf32> to vector<8x256xbf16>
    %c0_53 = arith.constant 0 : index
    %c0_54 = arith.constant 0 : index
    %115 = vector.load %arg7[%c0_53, %c0_54] : memref<256x64xbf16, #tpu.memory_space<vmem>>, vector<256x64xbf16>
    %cst_55 = arith.constant dense<0.000000e+00> : vector<8x64xf32>
    %116 = tpu.matmul %114, %115, %cst_55 {dimension_numbers = #tpu.dot_dimension_numbers<[1], [0], [0], [1], [0, 0, 1, 1], [], []>} : vector<8x256xbf16>, vector<256x64xbf16>, vector<8x64xf32> -> vector<8x64xf32>
    %c9 = arith.constant 9 : index
    %c0_56 = arith.constant 0 : index
    %117 = vector.load %arg10[%c9, %c0_56] : memref<12x128xf32, #tpu.memory_space<vmem>>, vector<1x64xf32>
    %118 = vector.broadcast %117 : vector<1x64xf32> to vector<8x64xf32>
    %119 = arith.addf %116, %118 : vector<8x64xf32>
    %120 = vector.extract_strided_slice %119 {offsets = [0, 0], sizes = [8, 32], strides = [1, 1]} : vector<8x64xf32> to vector<8x32xf32>
    %c0_57 = arith.constant 0 : index
    %121 = memref.load %arg12[%c0_57] : memref<8xf32, #tpu.memory_space<smem>>
    %c2_58 = arith.constant 2 : index
    %122 = memref.load %arg12[%c2_58] : memref<8xf32, #tpu.memory_space<smem>>
    %123 = vector.shape_cast %120 : vector<8x32xf32> to vector<1x8x32xf32>
    %cst_59 = arith.constant dense<0.000000e+00> : vector<1xf32>
    %124 = vector.multi_reduction <add>, %123, %cst_59 [1, 2] : vector<1x8x32xf32> to vector<1xf32>
    %125 = vector.shape_cast %124 : vector<1xf32> to vector<1x1x1xf32>
    %126 = vector.extract %125[0, 0, 0] : f32 from vector<1x1x1xf32>
    %cst_60 = arith.constant 2.560000e+02 : f32
    %127 = arith.divf %126, %cst_60 : f32
    %128 = vector.broadcast %127 : f32 to vector<8x32xf32>
    %129 = arith.subf %120, %128 : vector<8x32xf32>
    %130 = arith.mulf %129, %129 : vector<8x32xf32>
    %131 = vector.shape_cast %130 : vector<8x32xf32> to vector<1x8x32xf32>
    %cst_61 = arith.constant dense<0.000000e+00> : vector<1xf32>
    %132 = vector.multi_reduction <add>, %131, %cst_61 [1, 2] : vector<1x8x32xf32> to vector<1xf32>
    %133 = vector.shape_cast %132 : vector<1xf32> to vector<1x1x1xf32>
    %134 = vector.extract %133[0, 0, 0] : f32 from vector<1x1x1xf32>
    %cst_62 = arith.constant 2.560000e+02 : f32
    %135 = arith.divf %134, %cst_62 : f32
    %136 = vector.broadcast %127 : f32 to vector<8x32xf32>
    %137 = arith.subf %120, %136 : vector<8x32xf32>
    %cst_63 = arith.constant 9.99999974E-6 : f32
    %138 = arith.addf %135, %cst_63 : f32
    %139 = math.rsqrt %138 : f32
    %140 = vector.broadcast %139 : f32 to vector<8x32xf32>
    %141 = arith.mulf %137, %140 : vector<8x32xf32>
    %142 = vector.broadcast %121 : f32 to vector<8x32xf32>
    %143 = arith.mulf %141, %142 : vector<8x32xf32>
    %144 = vector.broadcast %122 : f32 to vector<8x32xf32>
    %145 = arith.addf %143, %144 : vector<8x32xf32>
    %146 = vector.extract_strided_slice %119 {offsets = [0, 32], sizes = [8, 32], strides = [1, 1]} : vector<8x64xf32> to vector<8x32xf32>
    %c1_64 = arith.constant 1 : index
    %147 = memref.load %arg12[%c1_64] : memref<8xf32, #tpu.memory_space<smem>>
    %c3_65 = arith.constant 3 : index
    %148 = memref.load %arg12[%c3_65] : memref<8xf32, #tpu.memory_space<smem>>
    %149 = vector.shape_cast %146 : vector<8x32xf32> to vector<1x8x32xf32>
    %cst_66 = arith.constant dense<0.000000e+00> : vector<1xf32>
    %150 = vector.multi_reduction <add>, %149, %cst_66 [1, 2] : vector<1x8x32xf32> to vector<1xf32>
    %151 = vector.shape_cast %150 : vector<1xf32> to vector<1x1x1xf32>
    %152 = vector.extract %151[0, 0, 0] : f32 from vector<1x1x1xf32>
    %cst_67 = arith.constant 2.560000e+02 : f32
    %153 = arith.divf %152, %cst_67 : f32
    %154 = vector.broadcast %153 : f32 to vector<8x32xf32>
    %155 = arith.subf %146, %154 : vector<8x32xf32>
    %156 = arith.mulf %155, %155 : vector<8x32xf32>
    %157 = vector.shape_cast %156 : vector<8x32xf32> to vector<1x8x32xf32>
    %cst_68 = arith.constant dense<0.000000e+00> : vector<1xf32>
    %158 = vector.multi_reduction <add>, %157, %cst_68 [1, 2] : vector<1x8x32xf32> to vector<1xf32>
    %159 = vector.shape_cast %158 : vector<1xf32> to vector<1x1x1xf32>
    %160 = vector.extract %159[0, 0, 0] : f32 from vector<1x1x1xf32>
    %cst_69 = arith.constant 2.560000e+02 : f32
    %161 = arith.divf %160, %cst_69 : f32
    %162 = vector.broadcast %153 : f32 to vector<8x32xf32>
    %163 = arith.subf %146, %162 : vector<8x32xf32>
    %cst_70 = arith.constant 9.99999974E-6 : f32
    %164 = arith.addf %161, %cst_70 : f32
    %165 = math.rsqrt %164 : f32
    %166 = vector.broadcast %165 : f32 to vector<8x32xf32>
    %167 = arith.mulf %163, %166 : vector<8x32xf32>
    %168 = vector.broadcast %147 : f32 to vector<8x32xf32>
    %169 = arith.mulf %167, %168 : vector<8x32xf32>
    %170 = vector.broadcast %148 : f32 to vector<8x32xf32>
    %171 = arith.addf %169, %170 : vector<8x32xf32>
    %172 = tpu.concatenate %145, %171 in 1 : vector<8x32xf32>, vector<8x32xf32> -> vector<8x64xf32>
    %cst_71 = arith.constant 0.000000e+00 : f32
    %173 = vector.broadcast %cst_71 : f32 to vector<8x64xf32>
    %174 = arith.maximumf %172, %173 : vector<8x64xf32>
    %175 = arith.truncf %174 : vector<8x64xf32> to vector<8x64xbf16>
    %c0_72 = arith.constant 0 : index
    %c0_73 = arith.constant 0 : index
    %176 = vector.load %arg8[%c0_72, %c0_73] : memref<64x64xbf16, #tpu.memory_space<vmem>>, vector<64x64xbf16>
    %cst_74 = arith.constant dense<0.000000e+00> : vector<8x64xf32>
    %177 = tpu.matmul %175, %176, %cst_74 {dimension_numbers = #tpu.dot_dimension_numbers<[1], [0], [0], [1], [0, 0, 1, 1], [], []>} : vector<8x64xbf16>, vector<64x64xbf16>, vector<8x64xf32> -> vector<8x64xf32>
    %c10 = arith.constant 10 : index
    %c0_75 = arith.constant 0 : index
    %178 = vector.load %arg10[%c10, %c0_75] : memref<12x128xf32, #tpu.memory_space<vmem>>, vector<1x64xf32>
    %179 = vector.broadcast %178 : vector<1x64xf32> to vector<8x64xf32>
    %180 = arith.addf %177, %179 : vector<8x64xf32>
    %181 = vector.extract_strided_slice %180 {offsets = [0, 0], sizes = [8, 32], strides = [1, 1]} : vector<8x64xf32> to vector<8x32xf32>
    %c4_76 = arith.constant 4 : index
    %182 = memref.load %arg12[%c4_76] : memref<8xf32, #tpu.memory_space<smem>>
    %c6_77 = arith.constant 6 : index
    %183 = memref.load %arg12[%c6_77] : memref<8xf32, #tpu.memory_space<smem>>
    %184 = vector.shape_cast %181 : vector<8x32xf32> to vector<1x8x32xf32>
    %cst_78 = arith.constant dense<0.000000e+00> : vector<1xf32>
    %185 = vector.multi_reduction <add>, %184, %cst_78 [1, 2] : vector<1x8x32xf32> to vector<1xf32>
    %186 = vector.shape_cast %185 : vector<1xf32> to vector<1x1x1xf32>
    %187 = vector.extract %186[0, 0, 0] : f32 from vector<1x1x1xf32>
    %cst_79 = arith.constant 2.560000e+02 : f32
    %188 = arith.divf %187, %cst_79 : f32
    %189 = vector.broadcast %188 : f32 to vector<8x32xf32>
    %190 = arith.subf %181, %189 : vector<8x32xf32>
    %191 = arith.mulf %190, %190 : vector<8x32xf32>
    %192 = vector.shape_cast %191 : vector<8x32xf32> to vector<1x8x32xf32>
    %cst_80 = arith.constant dense<0.000000e+00> : vector<1xf32>
    %193 = vector.multi_reduction <add>, %192, %cst_80 [1, 2] : vector<1x8x32xf32> to vector<1xf32>
    %194 = vector.shape_cast %193 : vector<1xf32> to vector<1x1x1xf32>
    %195 = vector.extract %194[0, 0, 0] : f32 from vector<1x1x1xf32>
    %cst_81 = arith.constant 2.560000e+02 : f32
    %196 = arith.divf %195, %cst_81 : f32
    %197 = vector.broadcast %188 : f32 to vector<8x32xf32>
    %198 = arith.subf %181, %197 : vector<8x32xf32>
    %cst_82 = arith.constant 9.99999974E-6 : f32
    %199 = arith.addf %196, %cst_82 : f32
    %200 = math.rsqrt %199 : f32
    %201 = vector.broadcast %200 : f32 to vector<8x32xf32>
    %202 = arith.mulf %198, %201 : vector<8x32xf32>
    %203 = vector.broadcast %182 : f32 to vector<8x32xf32>
    %204 = arith.mulf %202, %203 : vector<8x32xf32>
    %205 = vector.broadcast %183 : f32 to vector<8x32xf32>
    %206 = arith.addf %204, %205 : vector<8x32xf32>
    %207 = vector.extract_strided_slice %180 {offsets = [0, 32], sizes = [8, 32], strides = [1, 1]} : vector<8x64xf32> to vector<8x32xf32>
    %c5_83 = arith.constant 5 : index
    %208 = memref.load %arg12[%c5_83] : memref<8xf32, #tpu.memory_space<smem>>
    %c7_84 = arith.constant 7 : index
    %209 = memref.load %arg12[%c7_84] : memref<8xf32, #tpu.memory_space<smem>>
    %210 = vector.shape_cast %207 : vector<8x32xf32> to vector<1x8x32xf32>
    %cst_85 = arith.constant dense<0.000000e+00> : vector<1xf32>
    %211 = vector.multi_reduction <add>, %210, %cst_85 [1, 2] : vector<1x8x32xf32> to vector<1xf32>
    %212 = vector.shape_cast %211 : vector<1xf32> to vector<1x1x1xf32>
    %213 = vector.extract %212[0, 0, 0] : f32 from vector<1x1x1xf32>
    %cst_86 = arith.constant 2.560000e+02 : f32
    %214 = arith.divf %213, %cst_86 : f32
    %215 = vector.broadcast %214 : f32 to vector<8x32xf32>
    %216 = arith.subf %207, %215 : vector<8x32xf32>
    %217 = arith.mulf %216, %216 : vector<8x32xf32>
    %218 = vector.shape_cast %217 : vector<8x32xf32> to vector<1x8x32xf32>
    %cst_87 = arith.constant dense<0.000000e+00> : vector<1xf32>
    %219 = vector.multi_reduction <add>, %218, %cst_87 [1, 2] : vector<1x8x32xf32> to vector<1xf32>
    %220 = vector.shape_cast %219 : vector<1xf32> to vector<1x1x1xf32>
    %221 = vector.extract %220[0, 0, 0] : f32 from vector<1x1x1xf32>
    %cst_88 = arith.constant 2.560000e+02 : f32
    %222 = arith.divf %221, %cst_88 : f32
    %223 = vector.broadcast %214 : f32 to vector<8x32xf32>
    %224 = arith.subf %207, %223 : vector<8x32xf32>
    %cst_89 = arith.constant 9.99999974E-6 : f32
    %225 = arith.addf %222, %cst_89 : f32
    %226 = math.rsqrt %225 : f32
    %227 = vector.broadcast %226 : f32 to vector<8x32xf32>
    %228 = arith.mulf %224, %227 : vector<8x32xf32>
    %229 = vector.broadcast %208 : f32 to vector<8x32xf32>
    %230 = arith.mulf %228, %229 : vector<8x32xf32>
    %231 = vector.broadcast %209 : f32 to vector<8x32xf32>
    %232 = arith.addf %230, %231 : vector<8x32xf32>
    %233 = tpu.concatenate %206, %232 in 1 : vector<8x32xf32>, vector<8x32xf32> -> vector<8x64xf32>
    %cst_90 = arith.constant 0.000000e+00 : f32
    %234 = vector.broadcast %cst_90 : f32 to vector<8x64xf32>
    %235 = arith.maximumf %233, %234 : vector<8x64xf32>
    %c0_91 = arith.constant 0 : index
    %c0_92 = arith.constant 0 : index
    %236 = vector.load %arg9[%c0_91, %c0_92] : memref<64x128xf32, #tpu.memory_space<vmem>>, vector<64x128xf32>
    %cst_93 = arith.constant dense<0.000000e+00> : vector<8x128xf32>
    %237 = tpu.matmul %235, %236, %cst_93 {dimension_numbers = #tpu.dot_dimension_numbers<[1], [0], [0], [1], [0, 0, 1, 1], [], []>, precision = #tpu.contract_precision<fp32>} : vector<8x64xf32>, vector<64x128xf32>, vector<8x128xf32> -> vector<8x128xf32>
    %c11 = arith.constant 11 : index
    %c0_94 = arith.constant 0 : index
    %238 = vector.load %arg10[%c11, %c0_94] : memref<12x128xf32, #tpu.memory_space<vmem>>, vector<1x128xf32>
    %239 = vector.broadcast %238 : vector<1x128xf32> to vector<8x128xf32>
    %240 = arith.addf %237, %239 : vector<8x128xf32>
    %c0_95 = arith.constant 0 : index
    %c0_96 = arith.constant 0 : index
    %241 = vector.load %arg13[%c0_95, %c0_96] : memref<8x128xf32, #tpu.memory_space<vmem>>, vector<8x128xf32>
    tpu.vector_store %arg13[%c0_95, %c0_96], %240 {strides = array<i32>} : memref<8x128xf32, #tpu.memory_space<vmem>>, vector<8x128xf32>,
    return
  }
}

</mosaic_0001>

<bundles_post_ra>
// kernel: transconvnet_forward.1
= control target key start
LH: loop header
LB: loop body
LE: loop exit
PB: predicated region body
PF: predicated region fallthrough
CT: control target
= control target key end

     0   :  { %18 = vsyncpa [#allocation3], 0  ;;  %s6355_s0 = inlined_call_operand.hbm [shape: f32[8,16], index: 0, kind: input, shape index: {}]   ;;  %s6356_s1 = inlined_call_operand.vmem [shape: f32[16,32], index: 1, kind: input, shape index: {}]   ;;  %s6357_s2 = inlined_call_operand.vmem [shape: f32[32,32], index: 2, kind: input, shape index: {}]   ;;  %s6358_s3 = inlined_call_operand.vmem [shape: f32[32,32], index: 3, kind: input, shape index: {}]   ;;  %s6359_s4 = inlined_call_operand.vmem [shape: bf16[32,512], index: 4, kind: input, shape index: {}]   ;;  %s6360_s5 = inlined_call_operand.hbm [shape: bf16[512,512], index: 5, kind: input, shape index: {}]   ;;  %s6361_s6 = inlined_call_operand.hbm [shape: bf16[512,256], index: 6, kind: input, shape index: {}]   ;;  %s6362_s7 = inlined_call_operand.vmem [shape: bf16[256,64], index: 7, kind: input, shape index: {}]   ;;  %s6363_s8 = inlined_call_operand.hbm [shape: bf16[64,64], index: 8, kind: input, shape index: {}]   ;;  %s6364_s9 = inlined_call_operand.vmem [shape: f32[64,128], index: 9, kind: input, shape index: {}]   ;;  %s6365_s10 = inlined_call_operand.hbm [shape: f32[12,128], index: 10, kind: input, shape index: {}]   ;;  %s6366_s11 = inlined_call_operand.vmem [shape: f32[3,512], index: 11, kind: input, shape index: {}]   ;;  %s6367_s12 = inlined_call_operand.vmem [shape: f32[8], index: 12, kind: input, shape index: {}]   ;;  %s6368_s13 = inlined_call_operand.vmem [shape: f32[8,128], index: 13, kind: output, shape index: {}]  }
   0x1   :  { %19 = vsyncpa [#allocation6], 0 }
   0x2   :  { %20 = vsyncpa [#allocation9], 0 }
   0x3   :  { %21 = vsyncpa [#allocation4], 0  ;;  %s5732_s25 = smov [#allocation5]   ;;  %s5602_s29 = scalar_lea.hbm %s6360_s5, 16384 }
   0x4   :  { %s45_s26 = sshll.u32 %s5732_s25, 4  ;;  %p5603_p0 = scmp.ne.s32.totalorder %s6360_s5, %s5602_s29  ;;  %s46_s26 = int_to_ptr.vmem [resolvable:$true] %s45_s26 }
   0x5   :  { %p5606_p1 = scmp.lt.u32.totalorder %s5602_s29, %s6360_s5 }
   0x7   :  { %p5608_p2 = pnand %p5606_p1, %p5603_p0 }
   0x9   :  { %5611 = shalt.err (!%p5608_p2)
}
   0xa   :  { %s5612_s17 = scalar_lea.vmem %s46_s26, 16384  ;;  %p5617_p4 = scmp.lt.s32.totalorder %s46_s26, %s46_s26 }
   0xb   :  { %p5613_p3 = scmp.ne.s32.totalorder %s46_s26, %s5612_s17  ;;  %p5618_p5 = scmp.lt.s32.totalorder %s5612_s17, %s5612_s17 }
   0xd   :  { %p5619_p6 = por %p5618_p5, %p5617_p4 }
   0xf   :  { %p5620_p7 = pnand %p5619_p6, %p5613_p3 }
  0x11   :  { %5623 = shalt.err (!%p5620_p7)
}
  0x12   :  { %s5733_s18 = smov 256   ;;  %s5734_s19 = smov 16  }
  0x13   :  { %51 = dma.hbm_to_vmem [thread:$0]  %s6360_s5, 16384, %s46_s26, [#allocation6], %s5733_s18, %s5733_s18, %s5734_s19  }
  0x14   :  { %s5735_s22 = smov [#allocation8]   ;;  %s5624_s27 = scalar_lea.hbm %s6363_s8, 512 }
  0x15   :  { %s71_s23 = sshll.u32 %s5735_s22, 4  ;;  %p5625_p8 = scmp.ne.s32.totalorder %s6363_s8, %s5624_s27  ;;  %s72_s23 = int_to_ptr.vmem [resolvable:$true] %s71_s23 }
  0x16   :  { %p5628_p9 = scmp.lt.u32.totalorder %s5624_s27, %s6363_s8 }
  0x18   :  { %p5630_p10 = pnand %p5628_p9, %p5625_p8 }
  0x1a   :  { %5633 = shalt.err (!%p5630_p10)
}
  0x1b   :  { %s5634_s15 = scalar_lea.vmem %s72_s23, 512  ;;  %p5639_p12 = scmp.lt.s32.totalorder %s72_s23, %s72_s23 }
  0x1c   :  { %p5635_p11 = scmp.ne.s32.totalorder %s72_s23, %s5634_s15  ;;  %p5640_p13 = scmp.lt.s32.totalorder %s5634_s15, %s5634_s15 }
  0x1e   :  { %p5641_p0 = por %p5640_p13, %p5639_p12 }
  0x20   :  { %p5642_p1 = pnand %p5641_p0, %p5635_p11 }
  0x22   :  { %5645 = shalt.err (!%p5642_p1)
}
  0x23   :  { %s5736_s5 = smov 64   ;;  %s5737_s26 = smov 4  }
  0x24   :  { %77 = dma.hbm_to_vmem [thread:$0]  %s6363_s8, 512, %s72_s23, [#allocation9], %s5736_s5, %s5736_s5, %s5737_s26  }
  0x25   :  { %s5738_s18 = smov [#allocation2]   ;;  %s5739_s20 = smov [#allocation7]  }
  0x26   :  { %s28_s19 = sshll.u32 %s5738_s18, 4  ;;  %s57_s21 = sshll.u32 %s5739_s20, 4  ;;  %s29_s19 = int_to_ptr.vmem [resolvable:$true] %s28_s19  ;;  %s5843_s21 = int_to_ptr.vmem [resolvable:$true] %s57_s21 }
  0x27   :  { %s5646_s25 = scalar_lea.hbm %s6355_s0, 128 }
  0x28   :  { %p5647_p2 = scmp.ne.s32.totalorder %s6355_s0, %s5646_s25  ;;  %p5650_p3 = scmp.lt.u32.totalorder %s5646_s25, %s6355_s0 }
  0x2a   :  { %p5652_p4 = pnand %p5650_p3, %p5647_p2 }
  0x2c   :  { %5655 = shalt.err (!%p5652_p4)
}
  0x2d   :  { %s5656_s8 = scalar_lea.vmem %s29_s19, 128  ;;  %p5661_p6 = scmp.lt.s32.totalorder %s29_s19, %s29_s19 }
  0x2e   :  { %p5657_p5 = scmp.ne.s32.totalorder %s29_s19, %s5656_s8  ;;  %p5662_p7 = scmp.lt.s32.totalorder %s5656_s8, %s5656_s8 }
  0x30   :  { %p5663_p8 = por %p5662_p7, %p5661_p6 }
  0x32   :  { %p5664_p9 = pnand %p5663_p8, %p5657_p5 }
  0x34   :  { %5667 = shalt.err (!%p5664_p9)
}
  0x35   :  { %31 = dma.hbm_to_vmem [thread:$0]  %s6355_s0, 128, %s29_s19, [#allocation3]  }
  0x36   :  { %s5668_s26 = scalar_lea.hbm %s6361_s6, 8192 }
  0x37   :  { %p5669_p10 = scmp.ne.s32.totalorder %s6361_s6, %s5668_s26  ;;  %p5672_p11 = scmp.lt.u32.totalorder %s5668_s26, %s6361_s6 }
  0x39   :  { %p5674_p12 = pnand %p5672_p11, %p5669_p10 }
  0x3b   :  { %5677 = shalt.err (!%p5674_p12)
}
  0x3c   :  { %s5678_s22 = scalar_lea.vmem %s5843_s21, 8192  ;;  %p5683_p0 = scmp.lt.s32.totalorder %s5843_s21, %s5843_s21 }
  0x3d   :  { %p5679_p13 = scmp.ne.s32.totalorder %s5843_s21, %s5678_s22  ;;  %p5684_p1 = scmp.lt.s32.totalorder %s5678_s22, %s5678_s22 }
  0x3f   :  { %p5685_p2 = por %p5684_p1, %p5683_p0 }
  0x41   :  { %p5686_p3 = pnand %p5685_p2, %p5679_p13 }
  0x43   :  { %5689 = shalt.err (!%p5686_p3)
}
  0x44   :  { %s5740_s0 = smov 128   ;;  %s5741_s19 = smov 8  }
  0x45   :  { %63 = dma.hbm_to_vmem [thread:$0]  %s6361_s6, 8192, %s5843_s21, [#allocation6], %s5740_s0, %s5740_s0, %s5741_s19  }
  0x46   :  { %s100_s29 = sshll.u32 %s6367_s12, 4  ;;  %s5742_s30 = smov [#allocation10]   ;;  %s101_s29 = int_to_ptr.vmem [resolvable:$true] %s100_s29 }
  0x47   :  { %s85_s8 = sshll.u32 %s5742_s30, 4  ;;  %s5690_s15 = scalar_lea.hbm %s6365_s10, 256  ;;  %s86_s8 = int_to_ptr.vmem [resolvable:$true] %s85_s8 }
  0x48   :  { %p5691_p4 = scmp.ne.s32.totalorder %s6365_s10, %s5690_s15  ;;  %p5694_p5 = scmp.lt.u32.totalorder %s5690_s15, %s6365_s10 }
  0x4a   :  { %p5696_p6 = pnand %p5694_p5, %p5691_p4 }
  0x4c   :  { %5699 = shalt.err (!%p5696_p6)
}
  0x4d   :  { %s5700_s6 = scalar_lea.vmem %s86_s8, 256  ;;  %p5705_p8 = scmp.lt.s32.totalorder %s86_s8, %s86_s8 }
  0x4e   :  { %p5701_p7 = scmp.ne.s32.totalorder %s86_s8, %s5700_s6  ;;  %p5706_p9 = scmp.lt.s32.totalorder %s5700_s6, %s5700_s6 }
  0x50   :  { %p5707_p10 = por %p5706_p9, %p5705_p8 }
  0x52   :  { %p5708_p11 = pnand %p5707_p10, %p5701_p7 }
  0x54   :  { %5711 = shalt.err (!%p5708_p11)
}
  0x55   :  { %91 = dma.hbm_to_vmem [thread:$0]  %s6365_s10, 256, %s86_s8, [#allocation9], %s5740_s0, %s5740_s0, %s5741_s19  }
  0x56   :  { %s5712_s18 = scalar_lea.vmem %s101_s29, 16  ;;  %p5717_p13 = scmp.lt.s32.totalorder %s101_s29, %s101_s29 }
  0x57   :  { %p5713_p12 = scmp.ne.s32.totalorder %s101_s29, %s5712_s18  ;;  %p5718_p0 = scmp.lt.s32.totalorder %s5712_s18, %s5712_s18 }
  0x59   :  { %p5719_p1 = por %p5718_p0, %p5717_p13 }
  0x5b   :  { %p5720_p2 = pnand %p5719_p1, %p5713_p12 }
  0x5d   :  { %5723 = shalt.err (!%p5720_p2)
}
  0x5e   :  { %s5743_s20 = smov [#allocation11]  }
  0x5f   :  { %103 = dma.vmem_to_smem %s101_s29, 16, %s5743_s20, [#allocation4]  }
  0x60   :  { %5724 = dma.done.wait [#allocation3], 128  }
  0x61   :  { %5725 = vsyncadd [#allocation3], 4294967168 }
  0x62   :  { %5726 = dma.done.wait [#allocation6], 24576  }
  0x63   :  { %5727 = vsyncadd [#allocation6], 4294942720 }
  0x64   :  { %5728 = dma.done.wait [#allocation9], 768  }
  0x65   :  { %5729 = vsyncadd [#allocation9], 4294966528 }
  0x66   :  { %5730 = dma.done.wait [#allocation4], 16  }
  0x67   :  { %5731 = vsyncadd [#allocation4], 4294967280 }
  0x68   :  { %122 = sfence }
  0x69   :  { %v125_v0 = vld [vmem:[%s6356_s1] sm:$0xff]  ;;  %v126_v1 = vld [vmem:[%s6356_s1 + $0x8] sm:$0xff]  ;;  %v5744_v3 = vmov 0.0|0.0   ;;  %vm5745_vm0 = vmmov 0   ;;  %v5746_v6 = vmov 0.0   ;;  %vm132_vm1 = vcmask 130048  }
  0x6a   :  { %v124_v2 = vld [vmem:[#allocation2] sm:$0xff]  ;;  %5004 = vmatprep.subr.bf16.mxu0 %v5744_v3  ;;  %v137_v4 = vand.u32 4294901760, %v125_v0  ;;  %v140_v5 = vand.u32 4294901760, %v126_v1  ;;  %4708 = vmatprep.mubr.msk.f32.mxu0 %vm5745_vm0, %v5746_v6  ;;  %v632_v26 = vld [vmem:[%s6357_s2 + $0x8] sm:$0xff]  ;;  %v633_v27 = vld [vmem:[%s6357_s2 + $0x10] sm:$0xff]  ;;  %vm597_vm2 = vcmask 261120  }
  0x6b   :  { %v134_v7 = vsel %vm132_vm1, %v124_v2, 0  ;;  %5022 = vmatprep.subr.bf16.mxu1 %v5744_v3  ;;  %4754 = vmatprep.mubr.msk.f32.mxu1 %vm5745_vm0, %v5746_v6  ;;  %v631_v25 = vld [vmem:[%s6357_s2] sm:$0xff]  ;;  %v647_v29 = vand.u32 4294901760, %v632_v26  ;;  %v634_v30 = vld [vmem:[%s6357_s2 + $0x18] sm:$0xff]  ;;  %v650_v31 = vand.u32 4294901760, %v633_v27  ;;  %s3473_s1 = sld [smem:[#allocation11]] }
  0x6c   :  { %v5005_v8 = vpack.c.bf16 %v140_v5, %v137_v4  ;;  %v215_v9 = vsub.f32 %v125_v0, %v137_v4  ;;  %v222_v10 = vsub.f32 %v126_v1, %v140_v5  ;;  %v203_v11 = vand.u32 4294901760, %v134_v7  ;;  %v4301_v57 = vld [vmem:[#allocation10] ss:$0 sm:$0xff]  ;;  %s4532_s24 = sld [smem:[#allocation11 + $0x1]]  ;;  %s4531_s25 = sld [smem:[#allocation11 + $0x2]] }
  0x6d   :  { %v644_v28 = vand.u32 4294901760, %v631_v25  ;;  %v653_v32 = vand.u32 4294901760, %v634_v30  ;;  %v5935_v35 = vsub.f32 %v632_v26, %v647_v29  ;;  %v5937_v36 = vsub.f32 %v633_v27, %v650_v31  ;;  %s4533_s27 = sld [smem:[#allocation11 + $0x3]] }
  0x6e   :  { %5006 = vmatpush3.bf16.msra.mxu0 %v5005_v8  ;;  %v204_v12 = vsub.f32 %v134_v7, %v203_v11  ;;  %v216_v13 = vand.u32 4294901760, %v215_v9  ;;  %v223_v14 = vand.u32 4294901760, %v222_v10  ;;  %v5011_v23 = vpack.c.bf16 %v222_v10, %v215_v9 }
  0x6f   :  { %5007 = vmatprep.subr.bf16.mxu0 %v5744_v3  ;;  %v5931_v33 = vpack.c.bf16 %v647_v29, %v644_v28  ;;  %v5933_v34 = vsub.f32 %v631_v25, %v644_v28  ;;  %v5939_v37 = vsub.f32 %v634_v30, %v653_v32  ;;  %v5942_v38 = vpack.c.bf16 %v653_v32, %v650_v31  ;;  %v1162_v31 = vld [vmem:[%s6358_s3] sm:$0xff]  ;;  %v1163_v32 = vld [vmem:[%s6358_s3 + $0x8] sm:$0xff] }
  0x70   :  { %v205_v15 = vand.u32 4294901760, %v204_v12  ;;  %v217_v16 = vsub.f32 %v215_v9, %v216_v13  ;;  %v224_v17 = vsub.f32 %v222_v10, %v223_v14  ;;  %v5017_v24 = vpack.c.bf16 %v223_v14, %v216_v13 }
  0x71   :  { %5024 = vmatpush3.bf16.msra.mxu1 %v5931_v33  ;;  %v725_v39 = vand.u32 4294901760, %v5933_v34  ;;  %v732_v40 = vand.u32 4294901760, %v5935_v35  ;;  %v739_v45 = vand.u32 4294901760, %v5937_v36  ;;  %v746_v46 = vand.u32 4294901760, %v5939_v37 }
  0x72   :  { %v206_v18 = vsub.f32 %v204_v12, %v205_v15  ;;  %v218_v19 = vand.u32 4294901760, %v217_v16  ;;  %v225_v20 = vand.u32 4294901760, %v224_v17  ;;  %5025 = vmatprep.subr.bf16.mxu1 %v5744_v3  ;;  %v5035_v53 = vpack.c.bf16 %v5935_v35, %v5933_v34 }
  0x73   :  { %v726_v41 = vsub.f32 %v5933_v34, %v725_v39  ;;  %v733_v42 = vsub.f32 %v5935_v35, %v732_v40  ;;  %v740_v48 = vsub.f32 %v5937_v36, %v739_v45  ;;  %v747_v49 = vsub.f32 %v5939_v37, %v746_v46 }
  0x74   :  { %v207_v21 = vand.u32 4294901760, %v206_v18  ;;  %v5008_v22 = vpack.c.bf16 %v225_v20, %v218_v19  ;;  %v5038_v54 = vpack.c.bf16 %v5939_v37, %v5937_v36  ;;  %v5047_v55 = vpack.c.bf16 %v732_v40, %v725_v39  ;;  %v4302_v19 = vld [vmem:[#allocation10 + $0x1] ss:$0 sm:$0xff]  ;;  %v1164_v37 = vld [vmem:[%s6358_s3 + $0x10] sm:$0xff] }
  0x75   :  { %5027 = vmatpush3.bf16.msra.mxu1 %v5942_v38  ;;  %v727_v43 = vand.u32 4294901760, %v726_v41  ;;  %v734_v44 = vand.u32 4294901760, %v733_v42  ;;  %v741_v50 = vand.u32 4294901760, %v740_v48  ;;  %v748_v51 = vand.u32 4294901760, %v747_v49 }
  0x76   :  { %4709 = vmatmul.mubr.f32.vlgmr.msra.gmra.mrb[0].mxu0 %v207_v21  ;;  %5028 = vmatprep.subr.bf16.mxu1 %v5744_v3  ;;  %v5050_v56 = vpack.c.bf16 %v746_v46, %v739_v45  ;;  %v4303_v21 = vld [vmem:[#allocation10 + $0x2] ss:$0 sm:$0xff]  ;;  %v1178_v34 = vand.u32 4294901760, %v1163_v32  ;;  %v1181_v41 = vand.u32 4294901760, %v1164_v37  ;;  %vm3603_vm3 = vcmask 523264  }
  0x77   :  { %5009 = vmatpush3.bf16.msra.mxu0 %v5008_v22  ;;  %4715 = vmatprep.mubr.msk.f32.mxu0 %vm5745_vm0, %v5746_v6  ;;  %v5029_v47 = vpack.c.bf16 %v734_v44, %v727_v43  ;;  %v5032_v52 = vpack.c.bf16 %v748_v51, %v741_v50 }
  0x78   :  { %5010 = vmatprep.subr.bf16.mxu0 %v5744_v3  ;;  %v5996_v36 = vsub.f32 %v1163_v32, %v1178_v34  ;;  %v6008_v45 = vsub.f32 %v1164_v37, %v1181_v41  ;;  %v5270_v37 = vld [vmem:[%s6359_s4 + $0x4] ss:$16 sps:$4 sm:$0xff]  }
  0x7a   :  { %v1263_v40 = vand.u32 4294901760, %v5996_v36  ;;  %v1270_v49 = vand.u32 4294901760, %v6008_v45 }
  0x7c   :  { %v1264_v44 = vsub.f32 %v5996_v36, %v1263_v40 }
  0x7e   :  { %4716 = vmatmul.mubr.f32.vlgmr.msra.gmra.mrb[0].mxu0 %v203_v11  ;;  %v1265_v48 = vand.u32 4294901760, %v1264_v44  ;;  %v5285_v44 = vld [vmem:[#allocation5 + $0xc] ss:$16 sps:$4 sm:$0xff]  }
  0x7f   :  { %5012 = vmatpush3.bf16.msra.mxu0 %v5011_v23  ;;  %4722 = vmatprep.mubr.msk.f32.mxu0 %vm5745_vm0, %v5746_v6 }
  0x80   :  { %5013 = vmatprep.subr.bf16.mxu0 %v5744_v3 }
  0x86   :  { %4723 = vmatmul.mubr.f32.vlgmr.msra.gmra.mrb[0].mxu0 %v204_v12 }
  0x87   :  { %5015 = vmatpush3.bf16.msra.mxu0 %v5005_v8  ;;  %4729 = vmatprep.mubr.msk.f32.mxu0 %vm5745_vm0, %v5746_v6 }
  0x88   :  { %5016 = vmatprep.subr.bf16.mxu0 %v5744_v3 }
  0x8e   :  { %4730 = vmatmul.mubr.f32.vlgmr.msra.gmra.mrb[0].mxu0 %v205_v15 }
  0x8f   :  { %5018 = vmatpush3.bf16.msra.mxu0 %v5017_v24  ;;  %4736 = vmatprep.mubr.msk.f32.mxu0 %vm5745_vm0, %v5746_v6 }
  0x90   :  { %5019 = vmatprep.subr.bf16.mxu0 %v5744_v3 }
  0x96   :  { %4737 = vmatmul.mubr.f32.vlgmr.msra.gmra.mrb[0].mxu0 %v203_v11 }
  0x97   :  { %5021 = vmatpush3.bf16.msra.mxu0 %v5005_v8  ;;  %4743 = vmatprep.mubr.msk.f32.mxu0 %vm5745_vm0, %v5746_v6 }
  0x98   :  { %5064 = vmatprep.subr.bf16.mxu0 %v5744_v3 }
  0x9e   :  { %4744 = vmatmul.mubr.f32.vlgmr.msra.gmra.mrb[0].mxu0 %v203_v11 }
  0x9f   :  { %4831 = vmatprep.mubr.msk.f32.mxu0 %vm5745_vm0, %v5746_v6 }
 0x171   :  { %v591_v58 = vpop.f32.mrb[0].mxu0 }
 0x172   :  { %v5166_v59 = vadd.f32 %v4301_v57, %v591_v58  ;;  %v4745_v60 = vpop.f32.mrb[1].mxu0 }
 0x174   :  { %v598_v61 = vsel %vm597_vm2, %v5166_v59, 0.0 }
 0x175   :  { %v599_v62 = vrot.slane %v598_v61, 4 }
 0x177   :  { %v600_v63 = vadd.f32 %v599_v62, %v598_v61 }
 0x179   :  { %v601_v0 = vrot.slane %v600_v63, 2 }
 0x17b   :  { %v602_v1 = vadd.f32 %v601_v0, %v600_v63  ;;  %v4304_v63 = vld [vmem:[#allocation10 + $0x3] ss:$0 sm:$0xff] }
 0x17d   :  { %v603_v2 = vrot.slane %v602_v1, 1 }
 0x17f   :  { %v604_v4 = vadd.f32 %v603_v2, %v602_v1 }
 0x181   :  { %v606_v5 = vmul.f32 0.125, %v604_v4 }
 0x183   :  { %v607_v7 = vsub.f32 %v5166_v59, %v606_v5 }
 0x185   :  { %v608_v8 = vmul.f32 %v607_v7, %v607_v7 }
 0x187   :  { %v609_v9 = vsel %vm597_vm2, %v608_v8, 0.0 }
 0x188   :  { %v610_v10 = vrot.slane %v609_v9, 4 }
 0x18a   :  { %v611_v11 = vadd.f32 %v610_v10, %v609_v9 }
 0x18c   :  { %v612_v12 = vrot.slane %v611_v11, 2 }
 0x18e   :  { %v613_v13 = vadd.f32 %v612_v12, %v611_v11 }
 0x190   :  { %v614_v14 = vrot.slane %v613_v13, 1 }
 0x192   :  { %v615_v15 = vadd.f32 %v614_v14, %v613_v13 }
 0x194   :  { %v616_v16 = vmul.f32 0.125, %v615_v15 }
 0x196   :  { %v617_v17 = vadd.f32 1e-05, %v616_v16 }
 0x198   :  { %5588 = vrsqrt.f32 %v617_v17 }
 0x1a2   :  { %v5589_v18 = vpop.eup %5588 }
 0x1a3   :  { %v619_v20 = vmul.f32 %v5589_v18, %v607_v7 }
 0x1a5   :  { %v624_v22 = vmul.f32 %v4302_v19, %v619_v20 }
 0x1a7   :  { %v629_v23 = vadd.f32 %v4303_v21, %v624_v22 }
 0x1a9   :  { %v630_v24 = vmax.f32 %v629_v23, 0.0 }
 0x1ab   :  { %v641_v25 = vsel %vm597_vm2, %v630_v24, 0 }
 0x1ac   :  { %v712_v26 = vand.u32 4294901760, %v641_v25 }
 0x1ae   :  { %v713_v27 = vsub.f32 %v641_v25, %v712_v26  ;;  %v4305_v25 = vld [vmem:[#allocation10 + $0x4] ss:$0 sm:$0xff] }
 0x1b0   :  { %v714_v28 = vand.u32 4294901760, %v713_v27 }
 0x1b2   :  { %v715_v29 = vsub.f32 %v713_v27, %v714_v28 }
 0x1b4   :  { %v716_v30 = vand.u32 4294901760, %v715_v29 }
 0x1b6   :  { %4755 = vmatmul.mubr.f32.vlgmr.msra.gmra.mrb[0].mxu1 %v716_v30 }
 0x1b7   :  { %5030 = vmatpush3.bf16.msra.mxu1 %v5029_v47  ;;  %4765 = vmatprep.mubr.msk.f32.mxu1 %vm5745_vm0, %v5746_v6 }
 0x1b8   :  { %5031 = vmatprep.subr.bf16.mxu1 %v5744_v3 }
 0x1bb   :  { %5033 = vmatpush3.bf16.msra.mxu1 %v5032_v52  ;;  %v1271_v52 = vsub.f32 %v6008_v45, %v1270_v49 }
 0x1bc   :  { %5034 = vmatprep.subr.bf16.mxu1 %v5744_v3 }
 0x1be   :  { %4766 = vmatmul.mubr.f32.vlgmr.msra.gmra.mrb[0].mxu1 %v712_v26 }
 0x1bf   :  { %5036 = vmatpush3.bf16.msra.mxu1 %v5035_v53  ;;  %4776 = vmatprep.mubr.msk.f32.mxu1 %vm5745_vm0, %v5746_v6 }
 0x1c0   :  { %5037 = vmatprep.subr.bf16.mxu1 %v5744_v3 }
 0x1c3   :  { %5039 = vmatpush3.bf16.msra.mxu1 %v5038_v54  ;;  %v1272_v54 = vand.u32 4294901760, %v1271_v52  ;;  %v5307_v52 = vld [vmem:[#allocation5 + $0x88] ss:$16 sps:$4 sm:$0xff]  }
 0x1c4   :  { %5040 = vmatprep.subr.bf16.mxu1 %v5744_v3 }
 0x1c6   :  { %4777 = vmatmul.mubr.f32.vlgmr.msra.gmra.mrb[0].mxu1 %v713_v27  ;;  %v4306_v27 = vld [vmem:[#allocation10 + $0x5] ss:$0 sm:$0xff] }
 0x1c7   :  { %5042 = vmatpush3.bf16.msra.mxu1 %v5931_v33  ;;  %4787 = vmatprep.mubr.msk.f32.mxu1 %vm5745_vm0, %v5746_v6 }
 0x1c8   :  { %5043 = vmatprep.subr.bf16.mxu1 %v5744_v3 }
 0x1cb   :  { %5045 = vmatpush3.bf16.msra.mxu1 %v5942_v38 }
 0x1cc   :  { %5046 = vmatprep.subr.bf16.mxu1 %v5744_v3 }
 0x1ce   :  { %4788 = vmatmul.mubr.f32.vlgmr.msra.gmra.mrb[0].mxu1 %v714_v28 }
 0x1cf   :  { %5048 = vmatpush3.bf16.msra.mxu1 %v5047_v55  ;;  %4798 = vmatprep.mubr.msk.f32.mxu1 %vm5745_vm0, %v5746_v6 }
 0x1d0   :  { %5049 = vmatprep.subr.bf16.mxu1 %v5744_v3 }
 0x1d3   :  { %5051 = vmatpush3.bf16.msra.mxu1 %v5050_v56 }
 0x1d4   :  { %5052 = vmatprep.subr.bf16.mxu1 %v5744_v3 }
 0x1d6   :  { %4799 = vmatmul.mubr.f32.vlgmr.msra.gmra.mrb[0].mxu1 %v712_v26 }
 0x1d7   :  { %5054 = vmatpush3.bf16.msra.mxu1 %v5931_v33  ;;  %4809 = vmatprep.mubr.msk.f32.mxu1 %vm5745_vm0, %v5746_v6  ;;  %v1175_v33 = vand.u32 4294901760, %v1162_v31 }
 0x1d8   :  { %5055 = vmatprep.subr.bf16.mxu1 %v5744_v3 }
 0x1d9   :  { %v5994_v35 = vsub.f32 %v1162_v31, %v1175_v33  ;;  %v6018_v57 = vpack.c.bf16 %v1178_v34, %v1175_v33 }
 0x1db   :  { %5057 = vmatpush3.bf16.msra.mxu1 %v5942_v38  ;;  %v1165_v38 = vld [vmem:[%s6358_s3 + $0x18] sm:$0xff]  ;;  %v1256_v39 = vand.u32 4294901760, %v5994_v35  ;;  %v5071_v58 = vpack.c.bf16 %v5996_v36, %v5994_v35 }
 0x1dc   :  { %5058 = vmatprep.subr.bf16.mxu1 %v5744_v3  ;;  %v1184_v42 = vand.u32 4294901760, %v1165_v38 }
 0x1dd   :  { %v1257_v43 = vsub.f32 %v5994_v35, %v1256_v39  ;;  %v5083_v61 = vpack.c.bf16 %v1263_v40, %v1256_v39  ;;  %v5273_v39 = vld [vmem:[%s6359_s4 + $0x24] ss:$16 sps:$4 sm:$0xff]   ;;  %v5271_v40 = vld [vmem:[%s6359_s4 + $0x20] ss:$16 sps:$4 sm:$0xff]  }
 0x1de   :  { %4810 = vmatmul.mubr.f32.vlgmr.msra.gmra.mrb[0].mxu1 %v712_v26  ;;  %v6010_v46 = vsub.f32 %v1165_v38, %v1184_v42  ;;  %v6024_v59 = vpack.c.bf16 %v1184_v42, %v1181_v41  ;;  %v5268_v38 = vld [vmem:[%s6359_s4] ss:$16 sps:$4 sm:$0xff]   ;;  %v5276_v41 = vld [vmem:[%s6359_s4 + $0xc] ss:$16 sps:$4 sm:$0xff]   ;;  %v5747_v42 = vmov 0  }
 0x1df   :  { %4820 = vmatprep.mubr.msk.f32.mxu1 %vm5745_vm0, %v5746_v6  ;;  %v1258_v47 = vand.u32 4294901760, %v1257_v43  ;;  %5060 = vmatpush3.bf16.msra.mxu1 %v6018_v57  ;;  %v5283_v43 = vld [vmem:[#allocation5 + $0x8] ss:$16 sps:$4 sm:$0xff]  }
 0x1e0   :  { %v1277_v50 = vand.u32 4294901760, %v6010_v46  ;;  %5061 = vmatprep.subr.bf16.mxu1 %v5744_v3  ;;  %v5074_v60 = vpack.c.bf16 %v6010_v46, %v6008_v45  ;;  %v5291_v45 = vld [vmem:[#allocation5 + $0x2c] ss:$16 sps:$4 sm:$0xff]  }
 0x1e1   :  { %v5065_v51 = vpack.c.bf16 %v1265_v48, %v1258_v47  ;;  %v5297_v47 = vld [vmem:[#allocation5 + $0x4c] ss:$16 sps:$4 sm:$0xff]   ;;  %v5295_v48 = vld [vmem:[#allocation5 + $0x48] ss:$16 sps:$4 sm:$0xff]  }
 0x1e2   :  { %v1278_v53 = vsub.f32 %v6010_v46, %v1277_v50  ;;  %v5086_v62 = vpack.c.bf16 %v1277_v50, %v1270_v49  ;;  %v5289_v46 = vld [vmem:[#allocation5 + $0x28] ss:$16 sps:$4 sm:$0xff]   ;;  %v5303_v49 = vld [vmem:[#allocation5 + $0x6c] ss:$16 sps:$4 sm:$0xff]  }
 0x1e3   :  { %5066 = vmatpush3.bf16.msra.mxu0 %v5065_v51  ;;  %5063 = vmatpush3.bf16.msra.mxu1 %v6024_v59  ;;  %v5301_v50 = vld [vmem:[#allocation5 + $0x68] ss:$16 sps:$4 sm:$0xff]   ;;  %v5309_v51 = vld [vmem:[#allocation5 + $0x8c] ss:$16 sps:$4 sm:$0xff]  }
 0x1e4   :  { %v1279_v55 = vand.u32 4294901760, %v1278_v53  ;;  %5067 = vmatprep.subr.bf16.mxu0 %v5744_v3  ;;  %1766 = vmatprep.subr.bf16.mxu1 %v5270_v37  ;;  %v5315_v53 = vld [vmem:[#allocation5 + $0xac] ss:$16 sps:$4 sm:$0xff]  }
 0x1e6   :  { %v5068_v56 = vpack.c.bf16 %v1279_v55, %v1272_v54  ;;  %v5313_v54 = vld [vmem:[#allocation5 + $0xa8] ss:$16 sps:$4 sm:$0xff]   ;;  %v5321_v55 = vld [vmem:[#allocation5 + $0xcc] ss:$16 sps:$4 sm:$0xff]  }
 0x1e8   :  { %5069 = vmatpush3.bf16.msra.mxu0 %v5068_v56  ;;  %v5319_v56 = vld [vmem:[#allocation5 + $0xc8] ss:$16 sps:$4 sm:$0xff]  }
 0x1e9   :  { %5070 = vmatprep.subr.bf16.mxu0 %v5744_v3 }
 0x2b1   :  { %v1124_v0 = vpop.f32.mrb[0].mxu1 }
 0x2b2   :  { %v5167_v1 = vadd.f32 %v4304_v63, %v1124_v0  ;;  %v4811_v2 = vpop.f32.mrb[1].mxu1  ;;  %v5345_v0 = vld [vmem:[#allocation5 + $0x14c] ss:$16 sps:$4 sm:$0xff]  }
 0x2b3   :  { %v5343_v2 = vld [vmem:[#allocation5 + $0x148] ss:$16 sps:$4 sm:$0xff]  }
 0x2b4   :  { %v1130_v4 = vsel %vm597_vm2, %v5167_v1, 0.0 }
 0x2b5   :  { %v1131_v5 = vrot.slane %v1130_v4, 4 }
 0x2b7   :  { %v1132_v7 = vadd.f32 %v1131_v5, %v1130_v4  ;;  %v5351_v4 = vld [vmem:[#allocation5 + $0x16c] ss:$16 sps:$4 sm:$0xff]   ;;  %v5349_v5 = vld [vmem:[#allocation5 + $0x168] ss:$16 sps:$4 sm:$0xff]  }
 0x2b9   :  { %v1133_v8 = vrot.slane %v1132_v7, 2 }
 0x2bb   :  { %v1134_v9 = vadd.f32 %v1133_v8, %v1132_v7  ;;  %v5357_v7 = vld [vmem:[#allocation5 + $0x18c] ss:$16 sps:$4 sm:$0xff]   ;;  %v5355_v8 = vld [vmem:[#allocation5 + $0x188] ss:$16 sps:$4 sm:$0xff]  }
 0x2bd   :  { %v1135_v10 = vrot.slane %v1134_v9, 1 }
 0x2bf   :  { %v1136_v11 = vadd.f32 %v1135_v10, %v1134_v9  ;;  %v5363_v9 = vld [vmem:[#allocation5 + $0x1ac] ss:$16 sps:$4 sm:$0xff]   ;;  %v5361_v10 = vld [vmem:[#allocation5 + $0x1a8] ss:$16 sps:$4 sm:$0xff]  }
 0x2c1   :  { %v1137_v12 = vmul.f32 0.125, %v1136_v11  ;;  %v4307_v11 = vld [vmem:[#allocation10 + $0x6] ss:$0 sm:$0xff] }
 0x2c3   :  { %v1138_v13 = vsub.f32 %v5167_v1, %v1137_v12 }
 0x2c5   :  { %v1139_v14 = vmul.f32 %v1138_v13, %v1138_v13 }
 0x2c7   :  { %v1140_v15 = vsel %vm597_vm2, %v1139_v14, 0.0 }
 0x2c8   :  { %v1141_v16 = vrot.slane %v1140_v15, 4 }
 0x2ca   :  { %v1142_v17 = vadd.f32 %v1141_v16, %v1140_v15 }
 0x2cc   :  { %v1143_v18 = vrot.slane %v1142_v17, 2 }
 0x2ce   :  { %v1144_v19 = vadd.f32 %v1143_v18, %v1142_v17 }
 0x2d0   :  { %v1145_v20 = vrot.slane %v1144_v19, 1 }
 0x2d2   :  { %v1146_v21 = vadd.f32 %v1145_v20, %v1144_v19 }
 0x2d4   :  { %v1147_v22 = vmul.f32 0.125, %v1146_v21 }
 0x2d6   :  { %v1148_v23 = vadd.f32 1e-05, %v1147_v22 }
 0x2d8   :  { %5590 = vrsqrt.f32 %v1148_v23 }
 0x2e2   :  { %v5591_v24 = vpop.eup %5590 }
 0x2e3   :  { %v1150_v26 = vmul.f32 %v5591_v24, %v1138_v13 }
 0x2e5   :  { %v1155_v28 = vmul.f32 %v4305_v25, %v1150_v26 }
 0x2e7   :  { %v1160_v29 = vadd.f32 %v4306_v27, %v1155_v28 }
 0x2e9   :  { %v1161_v30 = vmax.f32 %v1160_v29, 0.0 }
 0x2eb   :  { %v1172_v31 = vsel %vm597_vm2, %v1161_v30, 0 }
 0x2ec   :  { %v1243_v32 = vand.u32 4294901760, %v1172_v31 }
 0x2ee   :  { %v1244_v33 = vsub.f32 %v1172_v31, %v1243_v32  ;;  %4832 = vmatmul.mubr.f32.vlgmr.msra.gmra.mrb[2].mxu0 %v1243_v32 }
 0x2ef   :  { %5072 = vmatpush3.bf16.msra.mxu0 %v5071_v58  ;;  %4842 = vmatprep.mubr.msk.f32.mxu0 %vm5745_vm0, %v5746_v6  ;;  %v5325_v58 = vld [vmem:[#allocation5 + $0xe8] ss:$16 sps:$4 sm:$0xff]  }
 0x2f0   :  { %5073 = vmatprep.subr.bf16.mxu0 %v5744_v3  ;;  %v1245_v34 = vand.u32 4294901760, %v1244_v33 }
 0x2f2   :  { %v1246_v35 = vsub.f32 %v1244_v33, %v1245_v34 }
 0x2f3   :  { %5075 = vmatpush3.bf16.msra.mxu0 %v5074_v60  ;;  %v5331_v60 = vld [vmem:[#allocation5 + $0x108] ss:$16 sps:$4 sm:$0xff]  }
 0x2f4   :  { %v1247_v36 = vand.u32 4294901760, %v1246_v35  ;;  %5076 = vmatprep.subr.bf16.mxu0 %v5744_v3 }
 0x2f6   :  { %4821 = vmatmul.mubr.f32.vlgmr.msra.gmra.mrb[2].mxu1 %v1247_v36  ;;  %4843 = vmatmul.mubr.f32.vlgmr.msra.gmra.mrb[2].mxu0 %v1244_v33  ;;  %v4308_v36 = vld [vmem:[#allocation10 + $0x7] ss:$0 sm:$0xff] }
 0x2f7   :  { %5078 = vmatpush3.bf16.msra.mxu0 %v6018_v57  ;;  %4853 = vmatprep.mubr.msk.f32.mxu0 %vm5745_vm0, %v5746_v6 }
 0x2f8   :  { %5079 = vmatprep.subr.bf16.mxu0 %v5744_v3  ;;  %1767 = vmatpush1.bf16.msra.mxu1 %v5268_v38  ;;  %v4309_v38 = vld [vmem:[#allocation10 + $0x8] ss:$0 sm:$0xff] }
 0x2f9   :  { %1768 = vmatprep.subr.bf16.mxu1 %v5273_v39  ;;  %1798 = vmatprep.mubr.bf16.mxu1 %v5747_v42 }
 0x2fb   :  { %5081 = vmatpush3.bf16.msra.mxu0 %v6024_v59 }
 0x2fc   :  { %5082 = vmatprep.subr.bf16.mxu0 %v5744_v3  ;;  %1769 = vmatpush1.bf16.msra.mxu1 %v5271_v40 }
 0x2fd   :  { %1807 = vmatprep.subr.bf16.mxu1 %v5276_v41  ;;  %v5274_v41 = vld [vmem:[%s6359_s4 + $0x8] ss:$16 sps:$4 sm:$0xff]  }
 0x2fe   :  { %4854 = vmatmul.mubr.f32.vlgmr.msra.gmra.mrb[2].mxu0 %v1245_v34 }
 0x2ff   :  { %5084 = vmatpush3.bf16.msra.mxu0 %v5083_v61  ;;  %4864 = vmatprep.mubr.msk.f32.mxu0 %vm5745_vm0, %v5746_v6  ;;  %v5339_v61 = vld [vmem:[#allocation5 + $0x12c] ss:$16 sps:$4 sm:$0xff]  }
 0x300   :  { %5085 = vmatprep.subr.bf16.mxu0 %v5744_v3 }
 0x303   :  { %5087 = vmatpush3.bf16.msra.mxu0 %v5086_v62  ;;  %v5337_v62 = vld [vmem:[#allocation5 + $0x128] ss:$16 sps:$4 sm:$0xff]  }
 0x304   :  { %5088 = vmatprep.subr.bf16.mxu0 %v5744_v3 }
 0x306   :  { %4865 = vmatmul.mubr.f32.vlgmr.msra.gmra.mrb[2].mxu0 %v1243_v32 }
 0x307   :  { %5090 = vmatpush3.bf16.msra.mxu0 %v6018_v57  ;;  %4875 = vmatprep.mubr.msk.f32.mxu0 %vm5745_vm0, %v5746_v6  ;;  %v5327_v57 = vld [vmem:[#allocation5 + $0xec] ss:$16 sps:$4 sm:$0xff]  }
 0x308   :  { %5091 = vmatprep.subr.bf16.mxu0 %v5744_v3 }
 0x30b   :  { %5093 = vmatpush3.bf16.msra.mxu0 %v6024_v59  ;;  %v5333_v59 = vld [vmem:[#allocation5 + $0x10c] ss:$16 sps:$4 sm:$0xff]  }
 0x30c   :  { %2729 = vmatprep.subr.bf16.mxu0 %v5285_v44  ;;  %v5279_v44 = vld [vmem:[%s6359_s4 + $0x2c] ss:$16 sps:$4 sm:$0xff]  }
 0x30e   :  { %4876 = vmatmul.mubr.f32.vlgmr.msra.gmra.mrb[2].mxu0 %v1243_v32 }
 0x30f   :  { %2730 = vmatpush1.bf16.msra.mxu0 %v5283_v43 }
 0x310   :  { %2731 = vmatprep.subr.bf16.mxu0 %v5291_v45  ;;  %v5277_v45 = vld [vmem:[%s6359_s4 + $0x28] ss:$16 sps:$4 sm:$0xff]  }
 0x313   :  { %2732 = vmatpush1.bf16.msra.mxu0 %v5289_v46  ;;  %v5282_v46 = vld [vmem:[#allocation5 + $0x4] ss:$16 sps:$4 sm:$0xff]  }
 0x314   :  { %2733 = vmatprep.subr.bf16.mxu0 %v5297_v47  ;;  %v5280_v47 = vld [vmem:[#allocation5] ss:$16 sps:$4 sm:$0xff]  }
 0x317   :  { %2734 = vmatpush1.bf16.msra.mxu0 %v5295_v48  ;;  %v5288_v48 = vld [vmem:[#allocation5 + $0x24] ss:$16 sps:$4 sm:$0xff]  }
 0x318   :  { %2735 = vmatprep.subr.bf16.mxu0 %v5303_v49  ;;  %v5286_v49 = vld [vmem:[#allocation5 + $0x20] ss:$16 sps:$4 sm:$0xff]  }
 0x31b   :  { %2736 = vmatpush1.bf16.msra.mxu0 %v5301_v50  ;;  %v5294_v50 = vld [vmem:[#allocation5 + $0x44] ss:$16 sps:$4 sm:$0xff]  }
 0x31c   :  { %2737 = vmatprep.subr.bf16.mxu0 %v5309_v51  ;;  %v5292_v51 = vld [vmem:[#allocation5 + $0x40] ss:$16 sps:$4 sm:$0xff]  }
 0x31f   :  { %2738 = vmatpush1.bf16.msra.mxu0 %v5307_v52  ;;  %v5300_v52 = vld [vmem:[#allocation5 + $0x64] ss:$16 sps:$4 sm:$0xff]  }
 0x320   :  { %2739 = vmatprep.subr.bf16.mxu0 %v5315_v53  ;;  %v5298_v53 = vld [vmem:[#allocation5 + $0x60] ss:$16 sps:$4 sm:$0xff]  }
 0x323   :  { %2740 = vmatpush1.bf16.msra.mxu0 %v5313_v54  ;;  %v5304_v54 = vld [vmem:[#allocation5 + $0x80] ss:$16 sps:$4 sm:$0xff]  }
 0x324   :  { %2741 = vmatprep.subr.bf16.mxu0 %v5321_v55  ;;  %v5312_v55 = vld [vmem:[#allocation5 + $0xa4] ss:$16 sps:$4 sm:$0xff]  }
 0x327   :  { %2742 = vmatpush1.bf16.msra.mxu0 %v5319_v56  ;;  %v5310_v56 = vld [vmem:[#allocation5 + $0xa0] ss:$16 sps:$4 sm:$0xff]  }
 0x328   :  { %2743 = vmatprep.subr.bf16.mxu0 %v5327_v57  ;;  %v5318_v57 = vld [vmem:[#allocation5 + $0xc4] ss:$16 sps:$4 sm:$0xff]  }
 0x32b   :  { %2744 = vmatpush1.bf16.msra.mxu0 %v5325_v58  ;;  %v5316_v58 = vld [vmem:[#allocation5 + $0xc0] ss:$16 sps:$4 sm:$0xff]  }
 0x32c   :  { %2745 = vmatprep.subr.bf16.mxu0 %v5333_v59  ;;  %v5324_v59 = vld [vmem:[#allocation5 + $0xe4] ss:$16 sps:$4 sm:$0xff]  }
 0x32f   :  { %2746 = vmatpush1.bf16.msra.mxu0 %v5331_v60  ;;  %v5322_v60 = vld [vmem:[#allocation5 + $0xe0] ss:$16 sps:$4 sm:$0xff]  }
 0x330   :  { %2747 = vmatprep.subr.bf16.mxu0 %v5339_v61  ;;  %v5330_v61 = vld [vmem:[#allocation5 + $0x104] ss:$16 sps:$4 sm:$0xff]  }
 0x333   :  { %2748 = vmatpush1.bf16.msra.mxu0 %v5337_v62  ;;  %v5328_v62 = vld [vmem:[#allocation5 + $0x100] ss:$16 sps:$4 sm:$0xff]  }
 0x334   :  { %2749 = vmatprep.subr.bf16.mxu0 %v5345_v0  ;;  %v5334_v0 = vld [vmem:[#allocation5 + $0x120] ss:$16 sps:$4 sm:$0xff]  }
 0x337   :  { %2750 = vmatpush1.bf16.msra.mxu0 %v5343_v2  ;;  %v5340_v2 = vld [vmem:[#allocation5 + $0x140] ss:$16 sps:$4 sm:$0xff]  }
 0x338   :  { %2751 = vmatprep.subr.bf16.mxu0 %v5351_v4  ;;  %v5348_v4 = vld [vmem:[#allocation5 + $0x164] ss:$16 sps:$4 sm:$0xff]  }
 0x33b   :  { %2752 = vmatpush1.bf16.msra.mxu0 %v5349_v5  ;;  %v5346_v5 = vld [vmem:[#allocation5 + $0x160] ss:$16 sps:$4 sm:$0xff]  }
 0x33c   :  { %2753 = vmatprep.subr.bf16.mxu0 %v5357_v7  ;;  %v5354_v7 = vld [vmem:[#allocation5 + $0x184] ss:$16 sps:$4 sm:$0xff]  }
 0x33f   :  { %2754 = vmatpush1.bf16.msra.mxu0 %v5355_v8  ;;  %v5352_v8 = vld [vmem:[#allocation5 + $0x180] ss:$16 sps:$4 sm:$0xff]  }
 0x340   :  { %2755 = vmatprep.subr.bf16.mxu0 %v5363_v9  ;;  %v5360_v9 = vld [vmem:[#allocation5 + $0x1a4] ss:$16 sps:$4 sm:$0xff]  }
 0x343   :  { %2756 = vmatpush1.bf16.msra.mxu0 %v5361_v10  ;;  %v5358_v10 = vld [vmem:[#allocation5 + $0x1a0] ss:$16 sps:$4 sm:$0xff]  }
 0x3c9   :  { %v1249_v63 = vpop.f32.mrb[2].mxu1 }
 0x3ca   :  { %v4822_v1 = vpop.f32.mrb[3].mxu1  ;;  %v1250_v12 = vadd.f32 %v4307_v11, %v1249_v63  ;;  %v5336_v63 = vld [vmem:[#allocation5 + $0x124] ss:$16 sps:$4 sm:$0xff]  }
 0x3cb   :  { %v5342_v1 = vld [vmem:[#allocation5 + $0x144] ss:$16 sps:$4 sm:$0xff]  }
 0x3cc   :  { %v5366_v11 = vld [vmem:[#allocation5 + $0x1c4] ss:$16 sps:$4 sm:$0xff]  }
 0x3e1   :  { %v1655_v13 = vpop.f32.mrb[2].mxu0 }
 0x3e2   :  { %v5169_v14 = vadd.f32 %v1655_v13, %v1250_v12  ;;  %v4877_v15 = vpop.f32.mrb[3].mxu0  ;;  %v5369_v12 = vld [vmem:[#allocation5 + $0x1cc] ss:$16 sps:$4 sm:$0xff]   ;;  %v5364_v13 = vld [vmem:[#allocation5 + $0x1c0] ss:$16 sps:$4 sm:$0xff]  }
 0x3e3   :  { %2757 = vmatprep.subr.bf16.mxu0 %v5369_v12  ;;  %v5372_v15 = vld [vmem:[#allocation5 + $0x1e4] ss:$16 sps:$4 sm:$0xff]   ;;  %v5423_v12 = vld [vmem:[#allocation5 + $0x2ec] ss:$16 sps:$4 sm:$0xff]  }
 0x3e4   :  { %v1661_v16 = vsel %vm597_vm2, %v5169_v14, 0.0 }
 0x3e5   :  { %v1662_v17 = vrot.slane %v1661_v16, 4 }
 0x3e7   :  { %v1663_v18 = vadd.f32 %v1662_v17, %v1661_v16  ;;  %v5375_v16 = vld [vmem:[#allocation5 + $0x1ec] ss:$16 sps:$4 sm:$0xff]   ;;  %v5370_v17 = vld [vmem:[#allocation5 + $0x1e0] ss:$16 sps:$4 sm:$0xff]  }
 0x3e9   :  { %v1664_v19 = vrot.slane %v1663_v18, 2 }
 0x3eb   :  { %v1665_v20 = vadd.f32 %v1664_v19, %v1663_v18  ;;  %v5373_v18 = vld [vmem:[#allocation5 + $0x1e8] ss:$16 sps:$4 sm:$0xff]   ;;  %v5378_v19 = vld [vmem:[#allocation5 + $0x204] ss:$16 sps:$4 sm:$0xff]  }
 0x3ed   :  { %v1666_v21 = vrot.slane %v1665_v20, 1 }
 0x3ef   :  { %v1667_v22 = vadd.f32 %v1666_v21, %v1665_v20  ;;  %v5381_v20 = vld [vmem:[#allocation5 + $0x20c] ss:$16 sps:$4 sm:$0xff]   ;;  %v1703_v21 = vlaneseq }
 0x3f1   :  { %v1668_v23 = vmul.f32 0.125, %v1667_v22  ;;  %v6081_v22 = vshrl.u32 %v1703_v21, 7  ;;  %v5430_v21 = vld [vmem:[#allocation5 + $0x320] ss:$16 sps:$4 sm:$0xff]  }
 0x3f3   :  { %v1669_v24 = vsub.f32 %v5169_v14, %v1668_v23  ;;  %v5367_v14 = vld [vmem:[#allocation5 + $0x1c8] ss:$16 sps:$4 sm:$0xff]   ;;  %v6084_v23 = vsub.s32 0, %v6081_v22 }
 0x3f4   :  { %2758 = vmatpush1.bf16.msra.mxu0 %v5367_v14  ;;  %v5421_v14 = vld [vmem:[#allocation5 + $0x2e8] ss:$16 sps:$4 sm:$0xff]  }
 0x3f5   :  { %v1670_v25 = vmul.f32 %v1669_v24, %v1669_v24  ;;  %2759 = vmatprep.subr.bf16.mxu0 %v5375_v16  ;;  %v5429_v16 = vld [vmem:[#allocation5 + $0x30c] ss:$16 sps:$4 sm:$0xff]  }
 0x3f7   :  { %v1671_v26 = vsel %vm597_vm2, %v1670_v25, 0.0  ;;  %v6092_v25 = vsub.s32 1, %v6081_v22 }
 0x3f8   :  { %v1672_v27 = vrot.slane %v1671_v26, 4  ;;  %2760 = vmatpush1.bf16.msra.mxu0 %v5373_v18  ;;  %v5427_v18 = vld [vmem:[#allocation5 + $0x308] ss:$16 sps:$4 sm:$0xff]  }
 0x3f9   :  { %2770 = vmatprep.subr.bf16.mxu0 %v5381_v20  ;;  %v5435_v20 = vld [vmem:[#allocation5 + $0x32c] ss:$16 sps:$4 sm:$0xff]  }
 0x3fa   :  { %v1673_v28 = vadd.f32 %v1672_v27, %v1671_v26 }
 0x3fc   :  { %v1674_v29 = vrot.slane %v1673_v28, 2 }
 0x3fe   :  { %v1675_v30 = vadd.f32 %v1674_v29, %v1673_v28 }
 0x400   :  { %v1676_v31 = vrot.slane %v1675_v30, 1 }
 0x402   :  { %v1677_v32 = vadd.f32 %v1676_v31, %v1675_v30 }
 0x404   :  { %v1678_v33 = vmul.f32 0.125, %v1677_v32 }
 0x406   :  { %v1679_v34 = vadd.f32 1e-05, %v1678_v33  ;;  %v1717_v33 = vsub.s32 3, %v6081_v22 }
 0x408   :  { %5592 = vrsqrt.f32 %v1679_v34 }
 0x412   :  { %v5593_v35 = vpop.eup %5592 }
 0x413   :  { %v1681_v37 = vmul.f32 %v5593_v35, %v1669_v24  ;;  %v6089_v24 = vld [vmem:[%s6366_s11] ss:$4 sm:$0xf] }
 0x414   :  { %v1706_v26 = vrot.slane %v6089_v24, %v6084_v23  ;;  %v1710_v27 = vrot.slane %v6089_v24, %v6092_v25 }
 0x415   :  { %v1686_v39 = vmul.f32 %v4308_v36, %v1681_v37 }
 0x417   :  { %v1691_v40 = vadd.f32 %v4309_v38, %v1686_v39  ;;  %v5376_v38 = vld [vmem:[#allocation5 + $0x200] ss:$16 sps:$4 sm:$0xff]   ;;  %v5379_v39 = vld [vmem:[#allocation5 + $0x208] ss:$16 sps:$4 sm:$0xff]  }
 0x419   :  { %v1692_v43 = vpack.c.bf16 %v1691_v40, %v1691_v40  ;;  %v1718_v40 = vrot.slane %v6089_v24, %v1717_v33 }
 0x41b   :  { %4318 = vmatmul.mubr.msk.bf16.vlgmr.msra.gmra.mrb[4].mxu1 %vm597_vm2, %v1692_v43 }
 0x41c   :  { %1808 = vmatpush1.bf16.msra.mxu1 %v5274_v41  ;;  %1839 = vmatprep.mubr.bf16.mxu1 %v5747_v42  ;;  %v5306_v42 = vld [vmem:[#allocation5 + $0x84] ss:$16 sps:$4 sm:$0xff]  }
 0x41d   :  { %1809 = vmatprep.subr.bf16.mxu1 %v5279_v44  ;;  %v5387_v44 = vld [vmem:[#allocation5 + $0x22c] ss:$16 sps:$4 sm:$0xff]  }
 0x420   :  { %1810 = vmatpush1.bf16.msra.mxu1 %v5277_v45 }
 0x421   :  { %2647 = vmatprep.subr.bf16.mxu1 %v5282_v46 }
 0x423   :  { %4319 = vmatmul.mubr.msk.bf16.vlgmr.msra.gmra.mrb[8].mxu1 %vm597_vm2, %v1692_v43  ;;  %v5384_v43 = vld [vmem:[#allocation5 + $0x224] ss:$16 sps:$4 sm:$0xff]  }
 0x424   :  { %2648 = vmatpush1.bf16.msra.mxu1 %v5280_v47 }
 0x425   :  { %2649 = vmatprep.subr.bf16.mxu1 %v5288_v48 }
 0x428   :  { %2650 = vmatpush1.bf16.msra.mxu1 %v5286_v49  ;;  %v5382_v49 = vld [vmem:[#allocation5 + $0x220] ss:$16 sps:$4 sm:$0xff]  }
 0x429   :  { %2651 = vmatprep.subr.bf16.mxu1 %v5294_v50  ;;  %v5385_v50 = vld [vmem:[#allocation5 + $0x228] ss:$16 sps:$4 sm:$0xff]  }
 0x42c   :  { %2652 = vmatpush1.bf16.msra.mxu1 %v5292_v51 }
 0x42d   :  { %2653 = vmatprep.subr.bf16.mxu1 %v5300_v52  ;;  %v5390_v52 = vld [vmem:[#allocation5 + $0x244] ss:$16 sps:$4 sm:$0xff]  }
 0x430   :  { %2654 = vmatpush1.bf16.msra.mxu1 %v5298_v53  ;;  %v5393_v53 = vld [vmem:[#allocation5 + $0x24c] ss:$16 sps:$4 sm:$0xff]  }
 0x431   :  { %2655 = vmatprep.subr.bf16.mxu1 %v5306_v42 }
 0x434   :  { %2656 = vmatpush1.bf16.msra.mxu1 %v5304_v54 }
 0x435   :  { %2657 = vmatprep.subr.bf16.mxu1 %v5312_v55  ;;  %v5388_v55 = vld [vmem:[#allocation5 + $0x240] ss:$16 sps:$4 sm:$0xff]  }
 0x438   :  { %2658 = vmatpush1.bf16.msra.mxu1 %v5310_v56  ;;  %v5391_v56 = vld [vmem:[#allocation5 + $0x248] ss:$16 sps:$4 sm:$0xff]  }
 0x439   :  { %2659 = vmatprep.subr.bf16.mxu1 %v5318_v57  ;;  %v5396_v57 = vld [vmem:[#allocation5 + $0x264] ss:$16 sps:$4 sm:$0xff]  }
 0x43c   :  { %2660 = vmatpush1.bf16.msra.mxu1 %v5316_v58  ;;  %v5399_v58 = vld [vmem:[#allocation5 + $0x26c] ss:$16 sps:$4 sm:$0xff]  }
 0x43d   :  { %2661 = vmatprep.subr.bf16.mxu1 %v5324_v59  ;;  %v5394_v59 = vld [vmem:[#allocation5 + $0x260] ss:$16 sps:$4 sm:$0xff]  }
 0x440   :  { %2662 = vmatpush1.bf16.msra.mxu1 %v5322_v60  ;;  %v5397_v60 = vld [vmem:[#allocation5 + $0x268] ss:$16 sps:$4 sm:$0xff]  }
 0x441   :  { %2663 = vmatprep.subr.bf16.mxu1 %v5330_v61  ;;  %v5402_v61 = vld [vmem:[#allocation5 + $0x284] ss:$16 sps:$4 sm:$0xff]  }
 0x444   :  { %2664 = vmatpush1.bf16.msra.mxu1 %v5328_v62  ;;  %v5405_v62 = vld [vmem:[#allocation5 + $0x28c] ss:$16 sps:$4 sm:$0xff]  }
 0x445   :  { %2665 = vmatprep.subr.bf16.mxu1 %v5336_v63  ;;  %v5400_v63 = vld [vmem:[#allocation5 + $0x280] ss:$16 sps:$4 sm:$0xff]  }
 0x448   :  { %2666 = vmatpush1.bf16.msra.mxu1 %v5334_v0  ;;  %v5403_v0 = vld [vmem:[#allocation5 + $0x288] ss:$16 sps:$4 sm:$0xff]  }
 0x449   :  { %2667 = vmatprep.subr.bf16.mxu1 %v5342_v1  ;;  %v5408_v1 = vld [vmem:[#allocation5 + $0x2a4] ss:$16 sps:$4 sm:$0xff]  }
 0x44c   :  { %2668 = vmatpush1.bf16.msra.mxu1 %v5340_v2  ;;  %v5411_v2 = vld [vmem:[#allocation5 + $0x2ac] ss:$16 sps:$4 sm:$0xff]  }
 0x44d   :  { %2669 = vmatprep.subr.bf16.mxu1 %v5348_v4  ;;  %v5406_v4 = vld [vmem:[#allocation5 + $0x2a0] ss:$16 sps:$4 sm:$0xff]  }
 0x450   :  { %2670 = vmatpush1.bf16.msra.mxu1 %v5346_v5  ;;  %v5409_v5 = vld [vmem:[#allocation5 + $0x2a8] ss:$16 sps:$4 sm:$0xff]  }
 0x451   :  { %2671 = vmatprep.subr.bf16.mxu1 %v5354_v7  ;;  %v5414_v7 = vld [vmem:[#allocation5 + $0x2c4] ss:$16 sps:$4 sm:$0xff]  }
 0x454   :  { %2672 = vmatpush1.bf16.msra.mxu1 %v5352_v8  ;;  %v5417_v8 = vld [vmem:[#allocation5 + $0x2cc] ss:$16 sps:$4 sm:$0xff]  }
 0x455   :  { %2673 = vmatprep.subr.bf16.mxu1 %v5360_v9  ;;  %v5412_v9 = vld [vmem:[#allocation5 + $0x2c0] ss:$16 sps:$4 sm:$0xff]  }
 0x458   :  { %2674 = vmatpush1.bf16.msra.mxu1 %v5358_v10  ;;  %v5415_v10 = vld [vmem:[#allocation5 + $0x2c8] ss:$16 sps:$4 sm:$0xff]  }
 0x459   :  { %2675 = vmatprep.subr.bf16.mxu1 %v5366_v11  ;;  %v5420_v11 = vld [vmem:[#allocation5 + $0x2e4] ss:$16 sps:$4 sm:$0xff]  }
 0x45c   :  { %2676 = vmatpush1.bf16.msra.mxu1 %v5364_v13  ;;  %v5418_v13 = vld [vmem:[#allocation5 + $0x2e0] ss:$16 sps:$4 sm:$0xff]  }
 0x45d   :  { %2677 = vmatprep.subr.bf16.mxu1 %v5372_v15  ;;  %v5426_v15 = vld [vmem:[#allocation5 + $0x304] ss:$16 sps:$4 sm:$0xff]  }
 0x460   :  { %2678 = vmatpush1.bf16.msra.mxu1 %v5370_v17  ;;  %v5424_v17 = vld [vmem:[#allocation5 + $0x300] ss:$16 sps:$4 sm:$0xff]  }
 0x461   :  { %2688 = vmatprep.subr.bf16.mxu1 %v5378_v19  ;;  %v5432_v19 = vld [vmem:[#allocation5 + $0x324] ss:$16 sps:$4 sm:$0xff]  }
 0x4ee   :  { %v1800_v28 = vpop.f32.mrb[4].mxu1 }
 0x4ef   :  { %v1801_v29 = vadd.f32 %v1800_v28, %v1706_v26  ;;  %v1802_v30 = vpop.f32.mrb[5].mxu1  ;;  %v5433_v26 = vld [vmem:[#allocation5 + $0x328] ss:$16 sps:$4 sm:$0xff]   ;;  %v5441_v28 = vld [vmem:[#allocation5 + $0x34c] ss:$16 sps:$4 sm:$0xff]  }
 0x4f0   :  { %v1803_v31 = vadd.f32 %v1802_v30, %v1710_v27  ;;  %v1804_v32 = vpop.f32.mrb[6].mxu1  ;;  %v5438_v27 = vld [vmem:[#allocation5 + $0x344] ss:$16 sps:$4 sm:$0xff]   ;;  %v5439_v30 = vld [vmem:[#allocation5 + $0x348] ss:$16 sps:$4 sm:$0xff]  }
 0x4f1   :  { %v1848_v34 = vmax.f32 %v1801_v29, 0.0  ;;  %v1805_v35 = vpop.f32.mrb[7].mxu1  ;;  %v5436_v29 = vld [vmem:[#allocation5 + $0x340] ss:$16 sps:$4 sm:$0xff]   ;;  %v5447_v32 = vld [vmem:[#allocation5 + $0x36c] ss:$16 sps:$4 sm:$0xff]  }
 0x4f2   :  { %v1849_v36 = vmax.f32 %v1803_v31, 0.0  ;;  %v5444_v31 = vld [vmem:[#allocation5 + $0x364] ss:$16 sps:$4 sm:$0xff]   ;;  %v5445_v35 = vld [vmem:[#allocation5 + $0x368] ss:$16 sps:$4 sm:$0xff]  }
 0x4f3   :  { %v1852_v41 = vpack.c.bf16 %v1848_v34, %v1848_v34  ;;  %v5442_v34 = vld [vmem:[#allocation5 + $0x360] ss:$16 sps:$4 sm:$0xff]  }
 0x4f4   :  { %v1853_v37 = vpack.c.bf16 %v1849_v36, %v1849_v36  ;;  %v5450_v36 = vld [vmem:[#allocation5 + $0x384] ss:$16 sps:$4 sm:$0xff]  }
 0x4f6   :  { %v6102_v45 = vpop.f32.mrb[8].mxu1  ;;  %2679 = vmatprep.mubr.bf16.mxu1 %v1853_v37  ;;  %2761 = vmatprep.mubr.bf16.mxu0 %v1853_v37  ;;  %v5453_v37 = vld [vmem:[#allocation5 + $0x38c] ss:$16 sps:$4 sm:$0xff]  }
 0x4f7   :  { %v1843_v46 = vpop.f32.mrb[9].mxu1  ;;  %2680 = vmatmul.mubr.bf16.vlgmr.msra.gmra.mrb[12].mxu1 %v1852_v41  ;;  %2762 = vmatmul.mubr.bf16.vlgmr.msra.gmra.mrb[4].mxu0 %v1852_v41  ;;  %v5456_v41 = vld [vmem:[#allocation5 + $0x3a4] ss:$16 sps:$4 sm:$0xff]  }
 0x4f8   :  { %v1844_v47 = vadd.f32 %v1843_v46, %v1718_v40  ;;  %2689 = vmatpush1.bf16.msra.mxu1 %v5376_v38  ;;  %2771 = vmatpush1.bf16.msra.mxu0 %v5379_v39  ;;  %v1845_v48 = vpop.f32.mrb[10].mxu1  ;;  %v5448_v38 = vld [vmem:[#allocation5 + $0x380] ss:$16 sps:$4 sm:$0xff]   ;;  %v5451_v39 = vld [vmem:[#allocation5 + $0x388] ss:$16 sps:$4 sm:$0xff]   ;;  %v1713_v40 = vsub.s32 2, %v6081_v22 }
 0x4f9   :  { %v1846_v51 = vpop.f32.mrb[11].mxu1  ;;  %2690 = vmatprep.subr.bf16.mxu1 %v5384_v43  ;;  %2772 = vmatprep.subr.bf16.mxu0 %v5387_v44  ;;  %v5459_v43 = vld [vmem:[#allocation5 + $0x3ac] ss:$16 sps:$4 sm:$0xff]   ;;  %v5454_v44 = vld [vmem:[#allocation5 + $0x3a0] ss:$16 sps:$4 sm:$0xff]  }
 0x4fa   :  { %v1851_v42 = vmax.f32 %v1844_v47, 0.0  ;;  %v5457_v46 = vld [vmem:[#allocation5 + $0x3a8] ss:$16 sps:$4 sm:$0xff]   ;;  %v1714_v47 = vrot.slane %v6089_v24, %v1713_v40  ;;  %v5462_v48 = vld [vmem:[#allocation5 + $0x3c4] ss:$16 sps:$4 sm:$0xff]  }
 0x4fb   :  { %v5463_v51 = vld [vmem:[#allocation5 + $0x3c8] ss:$16 sps:$4 sm:$0xff]   ;;  %v5474_v24 = vld [vmem:[#allocation7 + $0x4] ss:$8 sps:$4 sm:$0xff]  }
 0x4fc   :  { %v1855_v54 = vpack.c.bf16 %v1851_v42, %v1851_v42  ;;  %2691 = vmatpush1.bf16.msra.mxu1 %v5382_v49  ;;  %2773 = vmatpush1.bf16.msra.mxu0 %v5385_v50  ;;  %v5465_v49 = vld [vmem:[#allocation5 + $0x3cc] ss:$16 sps:$4 sm:$0xff]   ;;  %v5460_v50 = vld [vmem:[#allocation5 + $0x3c0] ss:$16 sps:$4 sm:$0xff]  }
 0x4fd   :  { %2692 = vmatprep.subr.bf16.mxu1 %v5390_v52  ;;  %2774 = vmatprep.subr.bf16.mxu0 %v5393_v53  ;;  %v1842_v52 = vadd.f32 %v6102_v45, %v1714_v47  ;;  %v5468_v53 = vld [vmem:[#allocation5 + $0x3e4] ss:$16 sps:$4 sm:$0xff]   ;;  %v5471_v42 = vld [vmem:[#allocation5 + $0x3ec] ss:$16 sps:$4 sm:$0xff]   ;;  %v5475_v45 = vld [vmem:[#allocation7 + $0x10] ss:$8 sps:$4 sm:$0xff]  }
 0x4fe   :  { %2720 = vmatprep.mubr.bf16.mxu1 %v1855_v54  ;;  %2802 = vmatprep.mubr.bf16.mxu0 %v1855_v54  ;;  %v5466_v54 = vld [vmem:[#allocation5 + $0x3e0] ss:$16 sps:$4 sm:$0xff]   ;;  %v5580_v47 = vld [vmem:[%s6362_s7 + $0x70] sm:$0xff]  }
 0x4ff   :  { %v5581_v22 = vld [vmem:[%s6362_s7 + $0x30] sm:$0xff]  }
 0x500   :  { %2693 = vmatpush1.bf16.msra.mxu1 %v5388_v55  ;;  %2775 = vmatpush1.bf16.msra.mxu0 %v5391_v56  ;;  %v5469_v55 = vld [vmem:[#allocation5 + $0x3e8] ss:$16 sps:$4 sm:$0xff]   ;;  %v1850_v56 = vmax.f32 %v1842_v52, 0.0 }
 0x501   :  { %2694 = vmatprep.subr.bf16.mxu1 %v5396_v57  ;;  %2776 = vmatprep.subr.bf16.mxu0 %v5399_v58  ;;  %v5472_v57 = vld [vmem:[#allocation7] ss:$8 sps:$4 sm:$0xff]  }
 0x502   :  { %v1854_v58 = vpack.c.bf16 %v1850_v56, %v1850_v56 }
 0x504   :  { %2695 = vmatpush1.bf16.msra.mxu1 %v5394_v59  ;;  %2777 = vmatpush1.bf16.msra.mxu0 %v5397_v60  ;;  %v5477_v59 = vld [vmem:[#allocation7 + $0x14] ss:$8 sps:$4 sm:$0xff]   ;;  %v5480_v60 = vld [vmem:[#allocation7 + $0x24] ss:$8 sps:$4 sm:$0xff]  }
 0x505   :  { %2696 = vmatprep.subr.bf16.mxu1 %v5402_v61  ;;  %2778 = vmatprep.subr.bf16.mxu0 %v5405_v62  ;;  %v5478_v61 = vld [vmem:[#allocation7 + $0x20] ss:$8 sps:$4 sm:$0xff]   ;;  %v5483_v62 = vld [vmem:[#allocation7 + $0x34] ss:$8 sps:$4 sm:$0xff]  }
 0x508   :  { %2697 = vmatpush1.bf16.msra.mxu1 %v5400_v63  ;;  %2779 = vmatpush1.bf16.msra.mxu0 %v5403_v0  ;;  %v5481_v63 = vld [vmem:[#allocation7 + $0x30] ss:$8 sps:$4 sm:$0xff]   ;;  %v5486_v0 = vld [vmem:[#allocation7 + $0x44] ss:$8 sps:$4 sm:$0xff]  }
 0x509   :  { %2698 = vmatprep.subr.bf16.mxu1 %v5408_v1  ;;  %2780 = vmatprep.subr.bf16.mxu0 %v5411_v2  ;;  %v5484_v1 = vld [vmem:[#allocation7 + $0x40] ss:$8 sps:$4 sm:$0xff]   ;;  %v5489_v2 = vld [vmem:[#allocation7 + $0x54] ss:$8 sps:$4 sm:$0xff]  }
 0x50c   :  { %2699 = vmatpush1.bf16.msra.mxu1 %v5406_v4  ;;  %2781 = vmatpush1.bf16.msra.mxu0 %v5409_v5  ;;  %v5487_v4 = vld [vmem:[#allocation7 + $0x50] ss:$8 sps:$4 sm:$0xff]   ;;  %v5492_v5 = vld [vmem:[#allocation7 + $0x64] ss:$8 sps:$4 sm:$0xff]  }
 0x50d   :  { %2700 = vmatprep.subr.bf16.mxu1 %v5414_v7  ;;  %2782 = vmatprep.subr.bf16.mxu0 %v5417_v8  ;;  %v5490_v7 = vld [vmem:[#allocation7 + $0x60] ss:$8 sps:$4 sm:$0xff]   ;;  %v5495_v8 = vld [vmem:[#allocation7 + $0x74] ss:$8 sps:$4 sm:$0xff]  }
 0x510   :  { %2701 = vmatpush1.bf16.msra.mxu1 %v5412_v9  ;;  %2783 = vmatpush1.bf16.msra.mxu0 %v5415_v10  ;;  %v5493_v9 = vld [vmem:[#allocation7 + $0x70] ss:$8 sps:$4 sm:$0xff]   ;;  %v5498_v10 = vld [vmem:[#allocation7 + $0x84] ss:$8 sps:$4 sm:$0xff]  }
 0x511   :  { %2702 = vmatprep.subr.bf16.mxu1 %v5420_v11  ;;  %2784 = vmatprep.subr.bf16.mxu0 %v5423_v12  ;;  %v5496_v11 = vld [vmem:[#allocation7 + $0x80] ss:$8 sps:$4 sm:$0xff]   ;;  %v5501_v12 = vld [vmem:[#allocation7 + $0x94] ss:$8 sps:$4 sm:$0xff]  }
 0x514   :  { %2703 = vmatpush1.bf16.msra.mxu1 %v5418_v13  ;;  %2785 = vmatpush1.bf16.msra.mxu0 %v5421_v14  ;;  %v5499_v13 = vld [vmem:[#allocation7 + $0x90] ss:$8 sps:$4 sm:$0xff]   ;;  %v5504_v14 = vld [vmem:[#allocation7 + $0xa4] ss:$8 sps:$4 sm:$0xff]  }
 0x515   :  { %2704 = vmatprep.subr.bf16.mxu1 %v5426_v15  ;;  %2786 = vmatprep.subr.bf16.mxu0 %v5429_v16  ;;  %v5502_v15 = vld [vmem:[#allocation7 + $0xa0] ss:$8 sps:$4 sm:$0xff]   ;;  %v5507_v16 = vld [vmem:[#allocation7 + $0xb4] ss:$8 sps:$4 sm:$0xff]  }
 0x518   :  { %2705 = vmatpush1.bf16.msra.mxu1 %v5424_v17  ;;  %2787 = vmatpush1.bf16.msra.mxu0 %v5427_v18  ;;  %v5505_v17 = vld [vmem:[#allocation7 + $0xb0] ss:$8 sps:$4 sm:$0xff]   ;;  %v5510_v18 = vld [vmem:[#allocation7 + $0xc4] ss:$8 sps:$4 sm:$0xff]  }
 0x519   :  { %2706 = vmatprep.subr.bf16.mxu1 %v5432_v19  ;;  %2788 = vmatprep.subr.bf16.mxu0 %v5435_v20  ;;  %v5508_v19 = vld [vmem:[#allocation7 + $0xc0] ss:$8 sps:$4 sm:$0xff]   ;;  %v5513_v20 = vld [vmem:[#allocation7 + $0xd4] ss:$8 sps:$4 sm:$0xff]  }
 0x51c   :  { %2707 = vmatpush1.bf16.msra.mxu1 %v5430_v21  ;;  %2789 = vmatpush1.bf16.msra.mxu0 %v5433_v26  ;;  %v5511_v21 = vld [vmem:[#allocation7 + $0xd0] ss:$8 sps:$4 sm:$0xff]   ;;  %v5516_v26 = vld [vmem:[#allocation7 + $0xe4] ss:$8 sps:$4 sm:$0xff]  }
 0x51d   :  { %2708 = vmatprep.subr.bf16.mxu1 %v5438_v27  ;;  %2790 = vmatprep.subr.bf16.mxu0 %v5441_v28  ;;  %v5514_v27 = vld [vmem:[#allocation7 + $0xe0] ss:$8 sps:$4 sm:$0xff]   ;;  %v5519_v28 = vld [vmem:[#allocation7 + $0xf4] ss:$8 sps:$4 sm:$0xff]  }
 0x520   :  { %2709 = vmatpush1.bf16.msra.mxu1 %v5436_v29  ;;  %2791 = vmatpush1.bf16.msra.mxu0 %v5439_v30  ;;  %v5517_v29 = vld [vmem:[#allocation7 + $0xf0] ss:$8 sps:$4 sm:$0xff]   ;;  %v5522_v30 = vld [vmem:[#allocation7 + $0x104] ss:$8 sps:$4 sm:$0xff]  }
 0x521   :  { %2710 = vmatprep.subr.bf16.mxu1 %v5444_v31  ;;  %2792 = vmatprep.subr.bf16.mxu0 %v5447_v32  ;;  %v5568_v31 = vld [vmem:[%s6362_s7 + $0x40] sm:$0xff]  }
 0x522   :  { %v5569_v32 = vld [vmem:[%s6362_s7] sm:$0xff]  }
 0x524   :  { %2711 = vmatpush1.bf16.msra.mxu1 %v5442_v34  ;;  %2793 = vmatpush1.bf16.msra.mxu0 %v5445_v35  ;;  %v5570_v34 = vld [vmem:[%s6362_s7 + $0x48] sm:$0xff]  }
 0x525   :  { %2712 = vmatprep.subr.bf16.mxu1 %v5450_v36  ;;  %2794 = vmatprep.subr.bf16.mxu0 %v5453_v37  ;;  %v5571_v35 = vld [vmem:[%s6362_s7 + $0x8] sm:$0xff]   ;;  %v5572_v36 = vld [vmem:[%s6362_s7 + $0x50] sm:$0xff]  }
 0x526   :  { %v5573_v37 = vld [vmem:[%s6362_s7 + $0x10] sm:$0xff]  }
 0x528   :  { %2713 = vmatpush1.bf16.msra.mxu1 %v5448_v38  ;;  %2795 = vmatpush1.bf16.msra.mxu0 %v5451_v39  ;;  %v5574_v38 = vld [vmem:[%s6362_s7 + $0x58] sm:$0xff]  }
 0x529   :  { %2714 = vmatprep.subr.bf16.mxu1 %v5456_v41  ;;  %2796 = vmatprep.subr.bf16.mxu0 %v5459_v43  ;;  %v5575_v39 = vld [vmem:[%s6362_s7 + $0x18] sm:$0xff]   ;;  %v5576_v41 = vld [vmem:[%s6362_s7 + $0x60] sm:$0xff]  }
 0x52a   :  { %v5577_v43 = vld [vmem:[%s6362_s7 + $0x20] sm:$0xff]  }
 0x52c   :  { %2715 = vmatpush1.bf16.msra.mxu1 %v5454_v44  ;;  %2797 = vmatpush1.bf16.msra.mxu0 %v5457_v46  ;;  %v5578_v44 = vld [vmem:[%s6362_s7 + $0x68] sm:$0xff]  }
 0x52d   :  { %2716 = vmatprep.subr.bf16.mxu1 %v5462_v48  ;;  %2798 = vmatprep.subr.bf16.mxu0 %v5465_v49  ;;  %v5579_v46 = vld [vmem:[%s6362_s7 + $0x28] sm:$0xff]  }
 0x52e   :  { %v6151_v48 = vld [vmem:[%s6366_s11 + $0x1] ss:$4 sm:$0xf] }
 0x52f   :  { %v1990_v49 = vrot.slane %v6151_v48, %v6084_v23 }
 0x530   :  { %2717 = vmatpush1.bf16.msra.mxu1 %v5460_v50  ;;  %2799 = vmatpush1.bf16.msra.mxu0 %v5463_v51  ;;  %v1994_v50 = vrot.slane %v6151_v48, %v6092_v25  ;;  %v2002_v51 = vrot.slane %v6151_v48, %v1717_v33 }
 0x531   :  { %2718 = vmatprep.subr.bf16.mxu1 %v5468_v53  ;;  %2800 = vmatprep.subr.bf16.mxu0 %v5471_v42 }
 0x534   :  { %2719 = vmatpush1.bf16.msra.mxu1 %v5466_v54  ;;  %2801 = vmatpush1.bf16.msra.mxu0 %v5469_v55 }
 0x535   :  { %3216 = vmatprep.subr.bf16.mxu1 %v5474_v24  ;;  %4623 = vmatprep.subr.bf16.mxu0 %v5568_v31  ;;  %v5556_v31 = vld [vmem:[#allocation7 + $0x1c0] ss:$8 sps:$4 sm:$0xff]  }
 0x537   :  { %2721 = vmatmul.mubr.bf16.vlgmr.msra.gmra.mrb[12].mxu1 %v1854_v58  ;;  %2803 = vmatmul.mubr.bf16.vlgmr.msra.gmra.mrb[4].mxu0 %v1854_v58 }
 0x538   :  { %3217 = vmatpush1.bf16.msra.mxu1 %v5472_v57  ;;  %4624 = vmatpush3.bf16.msra.mxu0 %v5569_v32  ;;  %v5561_v32 = vld [vmem:[#allocation7 + $0x1d4] ss:$8 sps:$4 sm:$0xff]  }
 0x539   :  { %3218 = vmatprep.subr.bf16.mxu1 %v5477_v59  ;;  %4625 = vmatprep.subr.bf16.mxu0 %v5570_v34  ;;  %v5559_v34 = vld [vmem:[#allocation7 + $0x1d0] ss:$8 sps:$4 sm:$0xff]  }
 0x53c   :  { %3219 = vmatpush1.bf16.msra.mxu1 %v5475_v45  ;;  %4626 = vmatpush3.bf16.msra.mxu0 %v5571_v35  ;;  %v1998_v35 = vrot.slane %v6151_v48, %v1713_v40  ;;  %v5582_v40 = vld [vmem:[%s6362_s7 + $0x78] sm:$0xff]  }
 0x53d   :  { %3220 = vmatprep.subr.bf16.mxu1 %v5480_v60  ;;  %4627 = vmatprep.subr.bf16.mxu0 %v5572_v36  ;;  %v5564_v36 = vld [vmem:[#allocation7 + $0x1e4] ss:$8 sps:$4 sm:$0xff]  }
 0x540   :  { %3221 = vmatpush1.bf16.msra.mxu1 %v5478_v61  ;;  %4628 = vmatpush3.bf16.msra.mxu0 %v5573_v37  ;;  %v5562_v37 = vld [vmem:[#allocation7 + $0x1e0] ss:$8 sps:$4 sm:$0xff]  }
 0x541   :  { %3222 = vmatprep.subr.bf16.mxu1 %v5483_v62  ;;  %4629 = vmatprep.subr.bf16.mxu0 %v5574_v38 }
 0x544   :  { %3223 = vmatpush1.bf16.msra.mxu1 %v5481_v63  ;;  %4630 = vmatpush3.bf16.msra.mxu0 %v5575_v39  ;;  %v5567_v39 = vld [vmem:[#allocation7 + $0x1f4] ss:$8 sps:$4 sm:$0xff]  }
 0x545   :  { %3224 = vmatprep.subr.bf16.mxu1 %v5486_v0  ;;  %4631 = vmatprep.subr.bf16.mxu0 %v5576_v41  ;;  %v5520_v0 = vld [vmem:[#allocation7 + $0x100] ss:$8 sps:$4 sm:$0xff]   ;;  %v5565_v41 = vld [vmem:[#allocation7 + $0x1f0] ss:$8 sps:$4 sm:$0xff]  }
 0x548   :  { %3225 = vmatpush1.bf16.msra.mxu1 %v5484_v1  ;;  %4632 = vmatpush3.bf16.msra.mxu0 %v5577_v43 }
 0x549   :  { %3226 = vmatprep.subr.bf16.mxu1 %v5489_v2  ;;  %4633 = vmatprep.subr.bf16.mxu0 %v5578_v44  ;;  %v5525_v2 = vld [vmem:[#allocation7 + $0x114] ss:$8 sps:$4 sm:$0xff]  }
 0x54c   :  { %3227 = vmatpush1.bf16.msra.mxu1 %v5487_v4  ;;  %4634 = vmatpush3.bf16.msra.mxu0 %v5579_v46  ;;  %v5523_v4 = vld [vmem:[#allocation7 + $0x110] ss:$8 sps:$4 sm:$0xff]  }
 0x54d   :  { %3228 = vmatprep.subr.bf16.mxu1 %v5492_v5  ;;  %4635 = vmatprep.subr.bf16.mxu0 %v5580_v47  ;;  %v5528_v5 = vld [vmem:[#allocation7 + $0x124] ss:$8 sps:$4 sm:$0xff]   ;;  %v5583_v46 = vld [vmem:[%s6362_s7 + $0x38] sm:$0xff]   ;;  %v4449_v47 = vld [vmem:[%s6366_s11 + $0x2] ss:$4 sm:$0x3] }
 0x54e   :  { %v2889_v48 = vrot.slane %v4449_v47, %v6084_v23  ;;  %s5748_s7 = smov 96  }
 0x550   :  { %3229 = vmatpush1.bf16.msra.mxu1 %v5490_v7  ;;  %v5526_v7 = vld [vmem:[#allocation7 + $0x120] ss:$8 sps:$4 sm:$0xff]   ;;  %4636 = vmatpush3.bf16.msra.mxu0 %v5581_v22 }
 0x551   :  { %3230 = vmatprep.subr.bf16.mxu1 %v5495_v8  ;;  %v5531_v8 = vld [vmem:[#allocation7 + $0x134] ss:$8 sps:$4 sm:$0xff]   ;;  %4637 = vmatprep.subr.bf16.mxu0 %v5582_v40 }
 0x554   :  { %3231 = vmatpush1.bf16.msra.mxu1 %v5493_v9  ;;  %v5529_v9 = vld [vmem:[#allocation7 + $0x130] ss:$8 sps:$4 sm:$0xff]   ;;  %4638 = vmatpush3.bf16.msra.mxu0 %v5583_v46 }
 0x555   :  { %3232 = vmatprep.subr.bf16.mxu1 %v5498_v10  ;;  %v5534_v10 = vld [vmem:[#allocation7 + $0x144] ss:$8 sps:$4 sm:$0xff]   ;;  %4878 = vmatprep.subr.bf16.mxu0 %v5746_v6  ;;  %v5587_v46 = vld [vmem:[#allocation8 + $0x18] sm:$0xff]  }
 0x558   :  { %3233 = vmatpush1.bf16.msra.mxu1 %v5496_v11  ;;  %v5532_v11 = vld [vmem:[#allocation7 + $0x140] ss:$8 sps:$4 sm:$0xff]  }
 0x559   :  { %3234 = vmatprep.subr.bf16.mxu1 %v5501_v12  ;;  %v5537_v12 = vld [vmem:[#allocation7 + $0x154] ss:$8 sps:$4 sm:$0xff]  }
 0x55c   :  { %3235 = vmatpush1.bf16.msra.mxu1 %v5499_v13  ;;  %v5535_v13 = vld [vmem:[#allocation7 + $0x150] ss:$8 sps:$4 sm:$0xff]  }
 0x55d   :  { %3236 = vmatprep.subr.bf16.mxu1 %v5504_v14  ;;  %v5540_v14 = vld [vmem:[#allocation7 + $0x164] ss:$8 sps:$4 sm:$0xff]  }
 0x560   :  { %3237 = vmatpush1.bf16.msra.mxu1 %v5502_v15  ;;  %v5538_v15 = vld [vmem:[#allocation7 + $0x160] ss:$8 sps:$4 sm:$0xff]  }
 0x561   :  { %3238 = vmatprep.subr.bf16.mxu1 %v5507_v16  ;;  %v5543_v16 = vld [vmem:[#allocation7 + $0x174] ss:$8 sps:$4 sm:$0xff]  }
 0x564   :  { %3239 = vmatpush1.bf16.msra.mxu1 %v5505_v17  ;;  %v5541_v17 = vld [vmem:[#allocation7 + $0x170] ss:$8 sps:$4 sm:$0xff]  }
 0x565   :  { %3240 = vmatprep.subr.bf16.mxu1 %v5510_v18  ;;  %v5546_v18 = vld [vmem:[#allocation7 + $0x184] ss:$8 sps:$4 sm:$0xff]  }
 0x568   :  { %3241 = vmatpush1.bf16.msra.mxu1 %v5508_v19  ;;  %v5544_v19 = vld [vmem:[#allocation7 + $0x180] ss:$8 sps:$4 sm:$0xff]  }
 0x569   :  { %3242 = vmatprep.subr.bf16.mxu1 %v5513_v20  ;;  %v5549_v20 = vld [vmem:[#allocation7 + $0x194] ss:$8 sps:$4 sm:$0xff]  }
 0x56c   :  { %3243 = vmatpush1.bf16.msra.mxu1 %v5511_v21  ;;  %v5547_v21 = vld [vmem:[#allocation7 + $0x190] ss:$8 sps:$4 sm:$0xff]  }
 0x56d   :  { %3244 = vmatprep.subr.bf16.mxu1 %v5516_v26  ;;  %v5552_v26 = vld [vmem:[#allocation7 + $0x1a4] ss:$8 sps:$4 sm:$0xff]  }
 0x570   :  { %3245 = vmatpush1.bf16.msra.mxu1 %v5514_v27  ;;  %v5550_v27 = vld [vmem:[#allocation7 + $0x1a0] ss:$8 sps:$4 sm:$0xff]  }
 0x571   :  { %3246 = vmatprep.subr.bf16.mxu1 %v5519_v28  ;;  %v5555_v28 = vld [vmem:[#allocation7 + $0x1b4] ss:$8 sps:$4 sm:$0xff]  }
 0x574   :  { %3247 = vmatpush1.bf16.msra.mxu1 %v5517_v29  ;;  %v5553_v29 = vld [vmem:[#allocation7 + $0x1b0] ss:$8 sps:$4 sm:$0xff]  }
 0x575   :  { %3257 = vmatprep.subr.bf16.mxu1 %v5522_v30  ;;  %v5558_v30 = vld [vmem:[#allocation7 + $0x1c4] ss:$8 sps:$4 sm:$0xff]  }
 0x60a   :  { %v2722_v52 = vpop.f32.mrb[12].mxu1  ;;  %v6160_v53 = vpop.f32.mrb[4].mxu0 }
 0x60b   :  { %v5170_v42 = vadd.f32 %v2722_v52, %v1990_v49  ;;  %v2724_v54 = vpop.f32.mrb[13].mxu1  ;;  %v2806_v55 = vpop.f32.mrb[5].mxu0  ;;  %v5172_v38 = vadd.f32 %v6160_v53, %v1998_v35  ;;  %v2893_v49 = vrot.slane %v4449_v47, %v6092_v25 }
 0x60c   :  { %v5171_v56 = vadd.f32 %v2724_v54, %v1994_v50  ;;  %v5173_v24 = vadd.f32 %v2806_v55, %v2002_v51  ;;  %v2726_v57 = vpop.f32.mrb[14].mxu1  ;;  %v2808_v58 = vpop.f32.mrb[6].mxu0 }
 0x60d   :  { %v2811_v59 = vmax.f32 %v5170_v42, 0.0  ;;  %v2727_v45 = vpop.f32.mrb[15].mxu1  ;;  %v2809_v60 = vpop.f32.mrb[7].mxu0  ;;  %v2813_v43 = vmax.f32 %v5172_v38, 0.0  ;;  %v4514_v57 = vld [vmem:[#allocation10 + $0x9] ss:$0 sm:$0xff] }
 0x60e   :  { %v2812_v61 = vmax.f32 %v5171_v56, 0.0  ;;  %v2814_v62 = vmax.f32 %v5173_v24, 0.0 }
 0x60f   :  { %v2815_v1 = vpack.c.bf16 %v2811_v59, %v2811_v59  ;;  %v2817_v44 = vpack.c.bf16 %v2813_v43, %v2813_v43 }
 0x610   :  { %v2816_v63 = vpack.c.bf16 %v2812_v61, %v2812_v61  ;;  %v2818_v33 = vpack.c.bf16 %v2814_v62, %v2814_v62 }
 0x612   :  { %3248 = vmatprep.mubr.bf16.mxu1 %v2816_v63 }
 0x613   :  { %3249 = vmatmul.mubr.bf16.vlgmr.msra.gmra.mrb[16].mxu1 %v2815_v1 }
 0x614   :  { %3258 = vmatpush1.bf16.msra.mxu1 %v5520_v0  ;;  %3289 = vmatprep.mubr.bf16.mxu1 %v2818_v33 }
 0x615   :  { %3259 = vmatprep.subr.bf16.mxu1 %v5525_v2 }
 0x618   :  { %3260 = vmatpush1.bf16.msra.mxu1 %v5523_v4 }
 0x619   :  { %3261 = vmatprep.subr.bf16.mxu1 %v5528_v5 }
 0x61c   :  { %3262 = vmatpush1.bf16.msra.mxu1 %v5526_v7 }
 0x61d   :  { %3263 = vmatprep.subr.bf16.mxu1 %v5531_v8 }
 0x620   :  { %3264 = vmatpush1.bf16.msra.mxu1 %v5529_v9 }
 0x621   :  { %3265 = vmatprep.subr.bf16.mxu1 %v5534_v10 }
 0x624   :  { %3266 = vmatpush1.bf16.msra.mxu1 %v5532_v11 }
 0x625   :  { %3267 = vmatprep.subr.bf16.mxu1 %v5537_v12 }
 0x628   :  { %3268 = vmatpush1.bf16.msra.mxu1 %v5535_v13 }
 0x629   :  { %3269 = vmatprep.subr.bf16.mxu1 %v5540_v14 }
 0x62c   :  { %3270 = vmatpush1.bf16.msra.mxu1 %v5538_v15 }
 0x62d   :  { %3271 = vmatprep.subr.bf16.mxu1 %v5543_v16 }
 0x630   :  { %3272 = vmatpush1.bf16.msra.mxu1 %v5541_v17 }
 0x631   :  { %3273 = vmatprep.subr.bf16.mxu1 %v5546_v18 }
 0x634   :  { %3274 = vmatpush1.bf16.msra.mxu1 %v5544_v19 }
 0x635   :  { %3275 = vmatprep.subr.bf16.mxu1 %v5549_v20 }
 0x638   :  { %3276 = vmatpush1.bf16.msra.mxu1 %v5547_v21 }
 0x639   :  { %3277 = vmatprep.subr.bf16.mxu1 %v5552_v26 }
 0x63c   :  { %3278 = vmatpush1.bf16.msra.mxu1 %v5550_v27 }
 0x63d   :  { %3279 = vmatprep.subr.bf16.mxu1 %v5555_v28 }
 0x640   :  { %3280 = vmatpush1.bf16.msra.mxu1 %v5553_v29 }
 0x641   :  { %3281 = vmatprep.subr.bf16.mxu1 %v5558_v30 }
 0x644   :  { %3282 = vmatpush1.bf16.msra.mxu1 %v5556_v31 }
 0x645   :  { %3283 = vmatprep.subr.bf16.mxu1 %v5561_v32 }
 0x648   :  { %3284 = vmatpush1.bf16.msra.mxu1 %v5559_v34 }
 0x649   :  { %3285 = vmatprep.subr.bf16.mxu1 %v5564_v36 }
 0x64c   :  { %3286 = vmatpush1.bf16.msra.mxu1 %v5562_v37  ;;  %v5584_v37 = vld [vmem:[#allocation8] sm:$0xff]  }
 0x64d   :  { %3287 = vmatprep.subr.bf16.mxu1 %v5567_v39  ;;  %v5585_v39 = vld [vmem:[#allocation8 + $0x8] sm:$0xff]  }
 0x650   :  { %3288 = vmatpush1.bf16.msra.mxu1 %v5565_v41 }
 0x653   :  { %3290 = vmatmul.mubr.bf16.vlgmr.msra.gmra.mrb[16].mxu1 %v2817_v44  ;;  %v5586_v44 = vld [vmem:[#allocation8 + $0x10] sm:$0xff]  }
 0x726   :  { %v3291_v50 = vpop.f32.mrb[16].mxu1 }
 0x727   :  { %v5174_v51 = vadd.f32 %v3291_v50, %v2889_v48  ;;  %v3293_v52 = vpop.f32.mrb[17].mxu1 }
 0x728   :  { %v5175_v53 = vadd.f32 %v3293_v52, %v2893_v49  ;;  %v3295_v42 = vpop.f32.mrb[18].mxu1 }
 0x729   :  { %v3296_v54 = vpop.f32.mrb[19].mxu1  ;;  %v3298_v56 = vpack.c.bf16 %v5174_v51, %v5174_v51 }
 0x72a   :  { %v3299_v55 = vpack.c.bf16 %v5175_v53, %v5175_v53  ;;  %v3510_v53 = vstv %s3473_s1  ;;  %v3559_v54 = vstv %s4532_s24 }
 0x72c   :  { %3465 = vmatprep.mubr.bf16.mxu0 %v3299_v55 }
 0x72d   :  { %3466 = vmatmul.mubr.bf16.vlgmr.msra.gmra.mrb[8].mxu0 %v3298_v56 }
 0x72e   :  { %4886 = vmatprep.mubr.msk.bf16.mxu0 %vm5745_vm0, %v5746_v6  ;;  %4879 = vmatpush3.bf16.msra.mxu0 %v5584_v37 }
 0x72f   :  { %4880 = vmatprep.subr.bf16.mxu0 %v5746_v6 }
 0x732   :  { %4881 = vmatpush3.bf16.msra.mxu0 %v5585_v39 }
 0x733   :  { %4882 = vmatprep.subr.bf16.mxu0 %v5746_v6 }
 0x736   :  { %4883 = vmatpush3.bf16.msra.mxu0 %v5586_v44 }
 0x737   :  { %4884 = vmatprep.subr.bf16.mxu0 %v5746_v6 }
 0x73a   :  { %4885 = vmatpush3.bf16.msra.mxu0 %v5587_v46 }
 0x73b   :  { %5094 = vmatprep.subr.bf16.mxu0 %v5744_v3 }
 0x800   :  { %v4639_v24 = vpop.f32.mrb[8].mxu0 }
 0x801   :  { %v4640_v58 = vpop.f32.mrb[9].mxu0 }
 0x802   :  { %v4641_v59 = vadd.f32 %v4640_v58, %v4639_v24  ;;  %v4642_v23 = vpop.f32.mrb[10].mxu0  ;;  %v3512_v24 = vstv %s4531_s25  ;;  %s4540_s25 = sld [smem:[#allocation11 + $0x4]] }
 0x803   :  { %v4643_v45 = vpop.f32.mrb[11].mxu0 }
 0x804   :  { %v3468_v25 = vadd.f32 %v4641_v59, %v4514_v57  ;;  %v3561_v57 = vstv %s4533_s27  ;;  %s4542_s27 = sld [smem:[#allocation11 + $0x5]] }
 0x806   :  { %3517 = vrot.lane.b32.xlu1 %v3468_v25, %s5748_s7  ;;  %v3475_v60 = vsel %vm597_vm2, %v3468_v25, 0.0 }
 0x807   :  { %3476 = vadd.xlane.f32.xlu0 %v3475_v60 }
 0x878   :  { %v3518_v61 = vpop.permute.xlu1 %3517 }
 0x879   :  { %v3520_v62 = vsel %vm597_vm2, %v3518_v61, 0.0  ;;  %v4534_v61 = vld [vmem:[#allocation10 + $0xa] ss:$0 sm:$0xff] }
 0x87a   :  { %3521 = vadd.xlane.f32.xlu1 %v3520_v62 }
 0x894   :  { %v3477_v63 = vpop.xlane.xlu0 %3476 }
 0x895   :  { %v3478_v0 = vrot.slane %v3477_v63, 4 }
 0x897   :  { %v3479_v1 = vadd.f32 %v3478_v0, %v3477_v63 }
 0x899   :  { %v3480_v2 = vrot.slane %v3479_v1, 2 }
 0x89b   :  { %v3481_v33 = vadd.f32 %v3480_v2, %v3479_v1 }
 0x89d   :  { %v3482_v4 = vrot.slane %v3481_v33, 1 }
 0x89f   :  { %v3483_v5 = vadd.f32 %v3482_v4, %v3481_v33 }
 0x8a1   :  { %5227 = vpush %v3483_v5 }
 0x8d2   :  { %s5228_s11 = spop %5227 }
 0x8d3   :  { %s3487_s3 = smul.f32 0.00390625, %s5228_s11 }
 0x8d5   :  { %v3488_v7 = vstv %s3487_s3 }
 0x8d6   :  { %v6186_v8 = vsub.f32 %v3468_v25, %v3488_v7 }
 0x8d8   :  { %v3490_v9 = vmul.f32 %v6186_v8, %v6186_v8 }
 0x8da   :  { %v3491_v10 = vsel %vm597_vm2, %v3490_v9, 0.0 }
 0x8db   :  { %3492 = vadd.xlane.f32.xlu0 %v3491_v10 }
 0x907   :  { %v3522_v18 = vpop.xlane.xlu1 %3521 }
 0x908   :  { %v3523_v19 = vrot.slane %v3522_v18, 4 }
 0x90a   :  { %v3524_v20 = vadd.f32 %v3523_v19, %v3522_v18 }
 0x90c   :  { %v3525_v21 = vrot.slane %v3524_v20, 2 }
 0x90e   :  { %v3526_v27 = vadd.f32 %v3525_v21, %v3524_v20 }
 0x910   :  { %v3527_v28 = vrot.slane %v3526_v27, 1 }
 0x912   :  { %v3528_v30 = vadd.f32 %v3527_v28, %v3526_v27 }
 0x968   :  { %v3493_v11 = vpop.xlane.xlu0 %3492 }
 0x969   :  { %v3494_v12 = vrot.slane %v3493_v11, 4 }
 0x96b   :  { %v3495_v13 = vadd.f32 %v3494_v12, %v3493_v11 }
 0x96d   :  { %v3496_v14 = vrot.slane %v3495_v13, 2 }
 0x96f   :  { %v3497_v15 = vadd.f32 %v3496_v14, %v3495_v13 }
 0x971   :  { %v3498_v16 = vrot.slane %v3497_v15, 1 }
 0x973   :  { %v3499_v17 = vadd.f32 %v3498_v16, %v3497_v15 }
 0x975   :  { %5229 = vpush %v3499_v17 }
 0x9a6   :  { %s5230_s6 = spop %5229 }
 0x9a7   :  { %s3503_s12 = smul.f32 0.00390625, %s5230_s6 }
 0x9a9   :  { %s3504_s21 = sadd.f32 1e-05, %s3503_s12 }
 0x9ab   :  { %v3505_v26 = vstv %s3504_s21 }
 0x9ac   :  { %5594 = vrsqrt.f32 %v3505_v26 }
 0x9b6   :  { %v5595_v29 = vpop.eup %5594 }
 0x9b7   :  { %5231 = vpush %v5595_v29 }
 0x9b8   :  { %5233 = vpush %v3528_v30 }
 0x9e8   :  { %s6191_s18 = spop %5231 }
 0x9e9   :  { %s5234_s20 = spop %5233  ;;  %v3508_v51 = vstv %s6191_s18 }
 0x9ea   :  { %s3532_s22 = smul.f32 0.00390625, %s5234_s20  ;;  %v3509_v52 = vmul.f32 %v3508_v51, %v6186_v8 }
 0x9ec   :  { %v3533_v31 = vstv %s3532_s22  ;;  %v3511_v55 = vmul.f32 %v3510_v53, %v3509_v52 }
 0x9ed   :  { %v3534_v32 = vsub.f32 %v3468_v25, %v3533_v31 }
 0x9ee   :  { %v3513_v59 = vadd.f32 %v3512_v24, %v3511_v55 }
 0x9ef   :  { %v3535_v34 = vmul.f32 %v3534_v32, %v3534_v32 }
 0x9f1   :  { %3537 = vrot.lane.b32.xlu0 %v3535_v34, %s5748_s7 }
 0xa63   :  { %v3538_v35 = vpop.permute.xlu0 %3537 }
 0xa64   :  { %v3540_v36 = vsel %vm597_vm2, %v3538_v35, 0.0 }
 0xa65   :  { %3541 = vadd.xlane.f32.xlu0 %v3540_v36 }
 0xaf2   :  { %v3542_v38 = vpop.xlane.xlu0 %3541 }
 0xaf3   :  { %v3543_v41 = vrot.slane %v3542_v38, 4 }
 0xaf5   :  { %v3544_v43 = vadd.f32 %v3543_v41, %v3542_v38 }
 0xaf7   :  { %v3545_v22 = vrot.slane %v3544_v43, 2 }
 0xaf9   :  { %v3546_v40 = vadd.f32 %v3545_v22, %v3544_v43 }
 0xafb   :  { %v3547_v47 = vrot.slane %v3546_v40, 1 }
 0xafd   :  { %v3548_v48 = vadd.f32 %v3547_v47, %v3546_v40  ;;  %v3739_v47 = vld [vmem:[%s6364_s9] sm:$0xff] }
 0xaff   :  { %5235 = vpush %v3548_v48  ;;  %v3740_v48 = vld [vmem:[%s6364_s9 + $0x8] sm:$0xff] }
 0xb30   :  { %s5236_s10 = spop %5235 }
 0xb31   :  { %s3552_s0 = smul.f32 0.00390625, %s5236_s10 }
 0xb33   :  { %s3553_s19 = sadd.f32 1e-05, %s3552_s0 }
 0xb35   :  { %v3554_v49 = vstv %s3553_s19 }
 0xb36   :  { %5596 = vrsqrt.f32 %v3554_v49  ;;  %v3756_v49 = vand.u32 4294901760, %v3739_v47 }
 0xb40   :  { %v5597_v50 = vpop.eup %5596 }
 0xb41   :  { %5237 = vpush %v5597_v50  ;;  %v3759_v50 = vand.u32 4294901760, %v3740_v48 }
 0xb43   :  { %v6227_v52 = vpack.c.bf16 %v3759_v50, %v3756_v49 }
 0xb72   :  { %s5238_s28 = spop %5237 }
 0xb73   :  { %v3557_v42 = vstv %s5238_s28  ;;  %s4541_s28 = sld [smem:[#allocation11 + $0x6]] }
 0xb74   :  { %v3558_v56 = vmul.f32 %v3557_v42, %v3534_v32  ;;  %v3741_v42 = vld [vmem:[%s6364_s9 + $0x10] sm:$0xff] }
 0xb75   :  { %v3762_v55 = vand.u32 4294901760, %v3741_v42 }
 0xb76   :  { %v3560_v58 = vmul.f32 %v3559_v54, %v3558_v56  ;;  %v3742_v54 = vld [vmem:[%s6364_s9 + $0x18] sm:$0xff] }
 0xb77   :  { %v3765_v56 = vand.u32 4294901760, %v3742_v54 }
 0xb78   :  { %v3562_v23 = vadd.f32 %v3561_v57, %v3560_v58 }
 0xb79   :  { %v6237_v57 = vpack.c.bf16 %v3765_v56, %v3762_v55 }
 0xb7a   :  { %v3563_v45 = vsel %vm597_vm2, %v3513_v59, %v3562_v23  ;;  %v3743_v59 = vld [vmem:[%s6364_s9 + $0x20] sm:$0xff]  ;;  %v3744_v23 = vld [vmem:[%s6364_s9 + $0x28] sm:$0xff] }
 0xb7b   :  { %v3564_v25 = vmax.f32 %v3563_v45, 0.0  ;;  %v3768_v45 = vand.u32 4294901760, %v3743_v59 }
 0xb7d   :  { %v3565_v60 = vpack.c.bf16 %v3564_v25, %v3564_v25  ;;  %v3771_v25 = vand.u32 4294901760, %v3744_v23 }
 0xb7f   :  { %4887 = vmatmul.mubr.msk.bf16.vlgmr.msra.gmra.mrb[12].mxu0 %vm3603_vm3, %v3565_v60 }
 0xb80   :  { %4906 = vmatprep.mubr.msk.f32.mxu0 %vm5745_vm0, %v5746_v6  ;;  %5096 = vmatpush3.bf16.msra.mxu0 %v6227_v52 }
 0xb81   :  { %5097 = vmatprep.subr.bf16.mxu0 %v5744_v3 }
 0xb84   :  { %5099 = vmatpush3.bf16.msra.mxu0 %v6237_v57 }
 0xb85   :  { %5100 = vmatprep.subr.bf16.mxu0 %v5744_v3 }
 0xc52   :  { %v3641_v62 = vpop.f32.mrb[12].mxu0 }
 0xc53   :  { %v3642_v63 = vadd.f32 %v4534_v61, %v3641_v62  ;;  %v4888_v0 = vpop.f32.mrb[13].mxu0  ;;  %v6247_v61 = vsub.f32 %v3739_v47, %v3756_v49  ;;  %v6249_v62 = vsub.f32 %v3740_v48, %v3759_v50 }
 0xc54   :  { %v3644_v1 = vpop.f32.mrb[14].mxu0  ;;  %v6253_v0 = vsub.f32 %v3742_v54, %v3765_v56 }
 0xc55   :  { %v4889_v2 = vpop.f32.mrb[15].mxu0  ;;  %v3649_v33 = vsel %vm597_vm2, %v3642_v63, 0.0  ;;  %v3745_v1 = vld [vmem:[%s6364_s9 + $0x30] sm:$0xff]  ;;  %v5119_v48 = vpack.c.bf16 %v6249_v62, %v6247_v61 }
 0xc56   :  { %3650 = vadd.xlane.f32.xlu1 %v3649_v33  ;;  %v3746_v2 = vld [vmem:[%s6364_s9 + $0x38] sm:$0xff]  ;;  %v6261_v33 = vpack.c.bf16 %v3771_v25, %v3768_v45 }
 0xc58   :  { %5102 = vmatpush3.bf16.msra.mxu0 %v6261_v33 }
 0xc59   :  { %5103 = vmatprep.subr.bf16.mxu0 %v5744_v3 }
 0xce3   :  { %v3651_v4 = vpop.xlane.xlu1 %3650 }
 0xce4   :  { %v3652_v5 = vrot.slane %v3651_v4, 4 }
 0xce6   :  { %v3653_v7 = vadd.f32 %v3652_v5, %v3651_v4  ;;  %v6263_v4 = vsub.f32 %v3743_v59, %v3768_v45  ;;  %v6265_v5 = vsub.f32 %v3744_v23, %v3771_v25  ;;  %v3684_v23 = vstv %s4540_s25 }
 0xce7   :  { %v3733_v25 = vstv %s4542_s27 }
 0xce8   :  { %v3654_v8 = vrot.slane %v3653_v7, 2  ;;  %v5125_v50 = vpack.c.bf16 %v6265_v5, %v6263_v4 }
 0xcea   :  { %v3655_v9 = vadd.f32 %v3654_v8, %v3653_v7  ;;  %v3774_v7 = vand.u32 4294901760, %v3745_v1  ;;  %v3777_v8 = vand.u32 4294901760, %v3746_v2 }
 0xcec   :  { %v3656_v10 = vrot.slane %v3655_v9, 1 }
 0xcee   :  { %v3657_v11 = vadd.f32 %v3656_v10, %v3655_v9  ;;  %v3841_v9 = vand.u32 4294901760, %v6247_v61  ;;  %v3848_v10 = vand.u32 4294901760, %v6249_v62 }
 0xcf0   :  { %5239 = vpush %v3657_v11  ;;  %v6270_v11 = vsub.f32 %v3745_v1, %v3774_v7 }
 0xd21   :  { %s5240_s29 = spop %5239 }
 0xd22   :  { %s3661_s4 = smul.f32 0.00390625, %s5240_s29  ;;  %s4543_s29 = sld [smem:[#allocation11 + $0x7]] }
 0xd24   :  { %v3662_v12 = vstv %s3661_s4 }
 0xd25   :  { %v6206_v13 = vsub.f32 %v3642_v63, %v3662_v12  ;;  %v6273_v12 = vpack.c.bf16 %v3777_v8, %v3774_v7 }
 0xd27   :  { %v3664_v14 = vmul.f32 %v6206_v13, %v6206_v13  ;;  %5105 = vmatpush3.bf16.msra.mxu0 %v6273_v12 }
 0xd28   :  { %5106 = vmatprep.subr.bf16.mxu0 %v5744_v3 }
 0xd29   :  { %v3665_v15 = vsel %vm597_vm2, %v3664_v14, 0.0  ;;  %v6275_v14 = vsub.f32 %v3746_v2, %v3777_v8 }
 0xd2a   :  { %3666 = vadd.xlane.f32.xlu1 %v3665_v15  ;;  %v3842_v15 = vsub.f32 %v6247_v61, %v3841_v9 }
 0xd3b   :  { %3691 = vrot.lane.b32.xlu1 %v3642_v63, %s5748_s7 }
 0xdb7   :  { %v3667_v16 = vpop.xlane.xlu1 %3666 }
 0xdb8   :  { %v3668_v17 = vrot.slane %v3667_v16, 4 }
 0xdba   :  { %v3669_v18 = vadd.f32 %v3668_v17, %v3667_v16  ;;  %v3849_v16 = vsub.f32 %v6249_v62, %v3848_v10  ;;  %v3843_v17 = vand.u32 4294901760, %v3842_v15  ;;  %v3686_v62 = vstv %s4541_s28 }
 0xdbb   :  { %v3692_v19 = vpop.permute.xlu1 %3691 }
 0xdbc   :  { %v3670_v20 = vrot.slane %v3669_v18, 2  ;;  %v3694_v21 = vsel %vm597_vm2, %v3692_v19, 0.0 }
 0xdbd   :  { %3695 = vadd.xlane.f32.xlu0 %v3694_v21 }
 0xdbe   :  { %v3671_v26 = vadd.f32 %v3670_v20, %v3669_v18  ;;  %v3850_v18 = vand.u32 4294901760, %v3849_v16  ;;  %v3862_v20 = vand.u32 4294901760, %v6253_v0 }
 0xdc0   :  { %v3672_v27 = vrot.slane %v3671_v26, 1  ;;  %v5107_v21 = vpack.c.bf16 %v3850_v18, %v3843_v17 }
 0xdc2   :  { %v3673_v28 = vadd.f32 %v3672_v27, %v3671_v26  ;;  %v3863_v27 = vsub.f32 %v6253_v0, %v3862_v20 }
 0xdc4   :  { %5241 = vpush %v3673_v28 }
 0xdf5   :  { %s5242_s30 = spop %5241 }
 0xdf6   :  { %s3677_s8 = smul.f32 0.00390625, %s5242_s30 }
 0xdf8   :  { %s3678_s2 = sadd.f32 1e-05, %s3677_s8 }
 0xdfa   :  { %v3679_v29 = vstv %s3678_s2 }
 0xdfb   :  { %5598 = vrsqrt.f32 %v3679_v29  ;;  %v3864_v29 = vand.u32 4294901760, %v3863_v27 }
 0xe05   :  { %v5599_v30 = vpop.eup %5598 }
 0xe06   :  { %5243 = vpush %v5599_v30  ;;  %v3869_v30 = vand.u32 4294901760, %v6263_v4 }
 0xe37   :  { %s6213_s23 = spop %5243 }
 0xe4a   :  { %v3696_v31 = vpop.xlane.xlu0 %3695 }
 0xe4b   :  { %v3697_v32 = vrot.slane %v3696_v31, 4 }
 0xe4d   :  { %v3698_v34 = vadd.f32 %v3697_v32, %v3696_v31  ;;  %v3876_v31 = vand.u32 4294901760, %v6265_v5 }
 0xe4f   :  { %v3699_v35 = vrot.slane %v3698_v34, 2 }
 0xe51   :  { %v3700_v36 = vadd.f32 %v3699_v35, %v3698_v34  ;;  %v3870_v34 = vsub.f32 %v6263_v4, %v3869_v30  ;;  %v3877_v35 = vsub.f32 %v6265_v5, %v3876_v31 }
 0xe53   :  { %v3701_v37 = vrot.slane %v3700_v36, 1 }
 0xe55   :  { %v3702_v38 = vadd.f32 %v3701_v37, %v3700_v36  ;;  %v3871_v36 = vand.u32 4294901760, %v3870_v34  ;;  %v3878_v37 = vand.u32 4294901760, %v3877_v35 }
 0xe57   :  { %5245 = vpush %v3702_v38  ;;  %v3883_v38 = vand.u32 4294901760, %v6270_v11 }
 0xe88   :  { %s5246_s14 = spop %5245 }
 0xe89   :  { %s3706_s15 = smul.f32 0.00390625, %s5246_s14 }
 0xe8b   :  { %v3707_v39 = vstv %s3706_s15 }
 0xe8c   :  { %v6215_v41 = vsub.f32 %v3642_v63, %v3707_v39  ;;  %v6251_v63 = vsub.f32 %v3741_v42, %v3762_v55  ;;  %v3890_v39 = vand.u32 4294901760, %v6275_v14  ;;  %v5143_v42 = vpack.c.bf16 %v3848_v10, %v3841_v9 }
 0xe8d   :  { %v6303_v55 = vpack.c.bf16 %v3876_v31, %v3869_v30 }
 0xe8e   :  { %v3709_v43 = vmul.f32 %v6215_v41, %v6215_v41  ;;  %v3855_v19 = vand.u32 4294901760, %v6251_v63  ;;  %v5122_v49 = vpack.c.bf16 %v6253_v0, %v6251_v63 }
 0xe90   :  { %3711 = vrot.lane.b32.xlu0 %v3709_v43, %s5748_s7  ;;  %v3856_v26 = vsub.f32 %v6251_v63, %v3855_v19  ;;  %v5113_v43 = vpack.c.bf16 %v3878_v37, %v3871_v36  ;;  %v6301_v54 = vpack.c.bf16 %v3862_v20, %v3855_v19  ;;  %v3735_v63 = vstv %s4543_s29 }
 0xe92   :  { %v3857_v28 = vand.u32 4294901760, %v3856_v26 }
 0xe94   :  { %v5110_v32 = vpack.c.bf16 %v3864_v29, %v3857_v28 }
 0xf02   :  { %v3712_v44 = vpop.permute.xlu0 %3711 }
 0xf03   :  { %v3714_v22 = vsel %vm597_vm2, %v3712_v44, 0.0  ;;  %v3884_v44 = vsub.f32 %v6270_v11, %v3883_v38 }
 0xf04   :  { %3715 = vadd.xlane.f32.xlu1 %v3714_v22  ;;  %v3891_v22 = vsub.f32 %v6275_v14, %v3890_v39 }
 0xf91   :  { %v3716_v40 = vpop.xlane.xlu1 %3715 }
 0xf92   :  { %v3717_v46 = vrot.slane %v3716_v40, 4 }
 0xf94   :  { %v3718_v51 = vadd.f32 %v3717_v46, %v3716_v40  ;;  %v3885_v40 = vand.u32 4294901760, %v3884_v44  ;;  %v3892_v46 = vand.u32 4294901760, %v3891_v22 }
 0xf96   :  { %v3719_v53 = vrot.slane %v3718_v51, 2  ;;  %v5116_v47 = vpack.c.bf16 %v3892_v46, %v3885_v40 }
 0xf98   :  { %v3720_v24 = vadd.f32 %v3719_v53, %v3718_v51  ;;  %v5128_v51 = vpack.c.bf16 %v6275_v14, %v6270_v11 }
 0xf9a   :  { %v3721_v58 = vrot.slane %v3720_v24, 1 }
 0xf9c   :  { %v3722_v60 = vadd.f32 %v3721_v58, %v3720_v24  ;;  %v6305_v24 = vpack.c.bf16 %v3890_v39, %v3883_v38  ;;  %v3682_v58 = vstv %s6213_s23 }
 0xf9d   :  { %v3683_v59 = vmul.f32 %v3682_v58, %v6206_v13 }
 0xf9e   :  { %5247 = vpush %v3722_v60 }
 0xf9f   :  { %v3685_v60 = vmul.f32 %v3684_v23, %v3683_v59 }
 0xfa1   :  { %v3687_v1 = vadd.f32 %v3686_v62, %v3685_v60 }
 0xfcf   :  { %s5248_s9 = spop %5247 }
 0xfd0   :  { %s3726_s1 = smul.f32 0.00390625, %s5248_s9 }
 0xfd2   :  { %s3727_s24 = sadd.f32 1e-05, %s3726_s1 }
 0xfd4   :  { %v3728_v53 = vstv %s3727_s24 }
 0xfd5   :  { %5600 = vrsqrt.f32 %v3728_v53 }
 0xfdf   :  { %v5601_v56 = vpop.eup %5600 }
 0xfe0   :  { %5249 = vpush %v5601_v56 }
0x1011   :  { %s5250_s4 = spop %5249 }
0x1012   :  { %v3731_v45 = vstv %s5250_s4 }
0x1013   :  { %v3732_v61 = vmul.f32 %v3731_v45, %v6215_v41  ;;  %v4544_v41 = vld [vmem:[#allocation10 + $0xb] ss:$0 sm:$0xff] }
0x1015   :  { %v3734_v0 = vmul.f32 %v3733_v25, %v3732_v61 }
0x1017   :  { %v3736_v2 = vadd.f32 %v3735_v63, %v3734_v0 }
0x1019   :  { %v3737_v4 = vsel %vm597_vm2, %v3687_v1, %v3736_v2 }
0x101a   :  { %v3738_v5 = vmax.f32 %v3737_v4, 0.0 }
0x101c   :  { %v3753_v7 = vsel %vm3603_vm3, %v3738_v5, 0 }
0x101d   :  { %v3828_v8 = vand.u32 4294901760, %v3753_v7 }
0x101f   :  { %v3829_v9 = vsub.f32 %v3753_v7, %v3828_v8 }
0x1021   :  { %v3830_v13 = vand.u32 4294901760, %v3829_v9 }
0x1023   :  { %v3831_v10 = vsub.f32 %v3829_v9, %v3830_v13 }
0x1025   :  { %v3832_v11 = vand.u32 4294901760, %v3831_v10 }
0x1027   :  { %4907 = vmatmul.mubr.f32.vlgmr.msra.gmra.mrb[16].mxu0 %v3832_v11 }
0x1028   :  { %5108 = vmatpush3.bf16.msra.mxu0 %v5107_v21  ;;  %4925 = vmatprep.mubr.msk.f32.mxu0 %vm5745_vm0, %v5746_v6 }
0x1029   :  { %5109 = vmatprep.subr.bf16.mxu0 %v5744_v3 }
0x102c   :  { %5111 = vmatpush3.bf16.msra.mxu0 %v5110_v32 }
0x102d   :  { %5112 = vmatprep.subr.bf16.mxu0 %v5744_v3 }
0x1030   :  { %5114 = vmatpush3.bf16.msra.mxu0 %v5113_v43 }
0x1031   :  { %5115 = vmatprep.subr.bf16.mxu0 %v5744_v3 }
0x1034   :  { %5117 = vmatpush3.bf16.msra.mxu0 %v5116_v47 }
0x1035   :  { %5118 = vmatprep.subr.bf16.mxu0 %v5744_v3 }
0x1037   :  { %4926 = vmatmul.mubr.f32.vlgmr.msra.gmra.mrb[16].mxu0 %v3828_v8 }
0x1038   :  { %5120 = vmatpush3.bf16.msra.mxu0 %v5119_v48  ;;  %4944 = vmatprep.mubr.msk.f32.mxu0 %vm5745_vm0, %v5746_v6 }
0x1039   :  { %5121 = vmatprep.subr.bf16.mxu0 %v5744_v3 }
0x103c   :  { %5123 = vmatpush3.bf16.msra.mxu0 %v5122_v49 }
0x103d   :  { %5124 = vmatprep.subr.bf16.mxu0 %v5744_v3 }
0x1040   :  { %5126 = vmatpush3.bf16.msra.mxu0 %v5125_v50 }
0x1041   :  { %5127 = vmatprep.subr.bf16.mxu0 %v5744_v3 }
0x1044   :  { %5129 = vmatpush3.bf16.msra.mxu0 %v5128_v51 }
0x1045   :  { %5130 = vmatprep.subr.bf16.mxu0 %v5744_v3 }
0x1047   :  { %4945 = vmatmul.mubr.f32.vlgmr.msra.gmra.mrb[16].mxu0 %v3829_v9 }
0x1048   :  { %5132 = vmatpush3.bf16.msra.mxu0 %v6227_v52  ;;  %4963 = vmatprep.mubr.msk.f32.mxu0 %vm5745_vm0, %v5746_v6 }
0x1049   :  { %5133 = vmatprep.subr.bf16.mxu0 %v5744_v3 }
0x104c   :  { %5135 = vmatpush3.bf16.msra.mxu0 %v6237_v57 }
0x104d   :  { %5136 = vmatprep.subr.bf16.mxu0 %v5744_v3 }
0x1050   :  { %5138 = vmatpush3.bf16.msra.mxu0 %v6261_v33 }
0x1051   :  { %5139 = vmatprep.subr.bf16.mxu0 %v5744_v3 }
0x1054   :  { %5141 = vmatpush3.bf16.msra.mxu0 %v6273_v12 }
0x1055   :  { %5142 = vmatprep.subr.bf16.mxu0 %v5744_v3 }
0x1057   :  { %4964 = vmatmul.mubr.f32.vlgmr.msra.gmra.mrb[16].mxu0 %v3830_v13 }
0x1058   :  { %5144 = vmatpush3.bf16.msra.mxu0 %v5143_v42  ;;  %4982 = vmatprep.mubr.msk.f32.mxu0 %vm5745_vm0, %v5746_v6 }
0x1059   :  { %5145 = vmatprep.subr.bf16.mxu0 %v5744_v3 }
0x105c   :  { %5147 = vmatpush3.bf16.msra.mxu0 %v6301_v54 }
0x105d   :  { %5148 = vmatprep.subr.bf16.mxu0 %v5744_v3 }
0x1060   :  { %5150 = vmatpush3.bf16.msra.mxu0 %v6303_v55 }
0x1061   :  { %5151 = vmatprep.subr.bf16.mxu0 %v5744_v3 }
0x1064   :  { %5153 = vmatpush3.bf16.msra.mxu0 %v6305_v24 }
0x1065   :  { %5154 = vmatprep.subr.bf16.mxu0 %v5744_v3 }
0x1067   :  { %4983 = vmatmul.mubr.f32.vlgmr.msra.gmra.mrb[16].mxu0 %v3828_v8 }
0x1068   :  { %5156 = vmatpush3.bf16.msra.mxu0 %v6227_v52  ;;  %5001 = vmatprep.mubr.msk.f32.mxu0 %vm5745_vm0, %v5746_v6 }
0x1069   :  { %5157 = vmatprep.subr.bf16.mxu0 %v5744_v3 }
0x106c   :  { %5159 = vmatpush3.bf16.msra.mxu0 %v6237_v57 }
0x106d   :  { %5160 = vmatprep.subr.bf16.mxu0 %v5744_v3 }
0x1070   :  { %5162 = vmatpush3.bf16.msra.mxu0 %v6261_v33 }
0x1071   :  { %5163 = vmatprep.subr.bf16.mxu0 %v5744_v3 }
0x1074   :  { %5165 = vmatpush3.bf16.msra.mxu0 %v6273_v12 }
0x1077   :  { %5002 = vmatmul.mubr.f32.vlgmr.msra.gmra.mrb[16].mxu0 %v3828_v8 }
0x114a   :  { %v4288_v14 = vpop.f32.mrb[16].mxu0 }
0x114b   :  { %v5176_v15 = vadd.f32 %v4544_v41, %v4288_v14  ;;  %v5003_v52 = vpop.f32.mrb[17].mxu0 }
0x114d   :  { %4292 = vst [vmem:[%s6368_s13] sm:$0xff] %v5176_v15 }
0x114e   :  { %4297 = vsyncpa [#allocation3], 1 }
0x114f   :  { %4298 = vsyncpa [#allocation6], 1 }
0x1150   :  { %4299 = vsyncpa [#allocation9], 1 }
0x1151   :  { %4300 = vsyncpa [#allocation4], 1 }

</bundles_post_ra>
